<compile_context>
chip_gen: v7x
topology: tpu7x:2x2x1
jax: 0.10.0
libtpu: 0.0.40
codegen_flags: <defaults>
</compile_context>

<pallas_src>
import functools

import jax
import jax.numpy as jnp
from jax.experimental import pallas as pl
from jax.experimental.pallas import tpu as pltpu


# ----------------------------- Pallas kernel ------------------------------ #

def _bilstm_rec_kernel(gxf_ref, gxb_ref, whhf_ref, whhb_ref,
                       outf_ref, outb_ref, hN_ref, cN_ref,
                       hf_sc, cf_sc, hb_sc, cb_sc, *, hidden, t_chunk):
    """Fused bidirectional LSTM recurrence over one chunk of Tc timesteps.

    gxf_ref: [Tc, B, 4H]  precomputed x @ W_ih_f^T + b_f for times c*Tc..c*Tc+Tc-1
    gxb_ref: [Tc, B, 4H]  same for the backward weights, but the BlockSpec fetches
                          the time chunk from the END (block NC-1-c), so local
                          index Tc-1-tt corresponds to original time T-1-s.
    """
    c_idx = pl.program_id(0)
    H = hidden
    Tc = t_chunk

    @pl.when(c_idx == 0)
    def _():
        hf_sc[...] = jnp.zeros_like(hf_sc)
        cf_sc[...] = jnp.zeros_like(cf_sc)
        hb_sc[...] = jnp.zeros_like(hb_sc)
        cb_sc[...] = jnp.zeros_like(cb_sc)

    whh_f = whhf_ref[...]                      # [H, 4H], loop-invariant
    whh_b = whhb_ref[...]

    def cell(gates, c_prev):
        # PyTorch gate order: i, f, g, o
        i = jax.nn.sigmoid(gates[:, 0 * H:1 * H])
        f = jax.nn.sigmoid(gates[:, 1 * H:2 * H])
        g = jnp.tanh(gates[:, 2 * H:3 * H])
        o = jax.nn.sigmoid(gates[:, 3 * H:4 * H])
        c = f * c_prev + i * g
        h = o * jnp.tanh(c)
        return h, c

    def step(tt, carry):
        h_f, c_f, h_b, c_b = carry

        # ---- forward direction: global time s = c_idx*Tc + tt ----
        gates_f = gxf_ref[tt] + jnp.dot(h_f, whh_f,
                                        preferred_element_type=jnp.float32)
        h_f, c_f = cell(gates_f, c_f)
        outf_ref[tt] = h_f.astype(outf_ref.dtype)

        # ---- backward direction: consumes original time T-1-s ----
        rt = Tc - 1 - tt
        gates_b = gxb_ref[rt] + jnp.dot(h_b, whh_b,
                                        preferred_element_type=jnp.float32)
        h_b, c_b = cell(gates_b, c_b)
        outb_ref[rt] = h_b.astype(outb_ref.dtype)

        return (h_f, c_f, h_b, c_b)

    carry0 = (hf_sc[...], cf_sc[...], hb_sc[...], cb_sc[...])
    h_f, c_f, h_b, c_b = jax.lax.fori_loop(0, Tc, step, carry0, unroll=True)

    # persist state for the next chunk
    hf_sc[...] = h_f
    cf_sc[...] = c_f
    hb_sc[...] = h_b
    cb_sc[...] = c_b

    # final (h, c) per direction; block index never changes, so HBM writeback
    # happens once at the end of the grid with the last chunk's values.
    hN_ref[0] = h_f.astype(hN_ref.dtype)
    hN_ref[1] = h_b.astype(hN_ref.dtype)
    cN_ref[0] = c_f.astype(cN_ref.dtype)
    cN_ref[1] = c_b.astype(cN_ref.dtype)


def _pick_time_chunk(T, max_chunk=16):
    """Largest divisor of T that is <= max_chunk (recurrence needs exact chunks)."""
    for tc in range(min(T, max_chunk), 0, -1):
        if T % tc == 0:
            return tc
    return 1


def bilstm_layer(gx_f, gx_b, w_hh_f, w_hh_b, *, out_dtype, time_chunk=None):
    """One bidirectional LSTM layer given precomputed input gates.

    gx_f / gx_b: [T, B, 4H] float32 (x @ W_ih^T + b_ih + b_hh) per direction.
    Returns (out_f [T,B,H], out_b [T,B,H] in original time order,
             hN [2,B,H], cN [2,B,H]) with index 0 = forward, 1 = backward.
    """
    T, B, G = gx_f.shape
    H = G // 4
    Tc = time_chunk if time_chunk is not None else _pick_time_chunk(T)
    assert T % Tc == 0, "time chunk must divide T"
    NC = T // Tc

    whh_f_t = jnp.transpose(w_hh_f).astype(jnp.float32)   # [H, 4H]
    whh_b_t = jnp.transpose(w_hh_b).astype(jnp.float32)   # [H, 4H]

    kernel = functools.partial(_bilstm_rec_kernel, hidden=H, t_chunk=Tc)
    out_f, out_b, hN, cN = pl.pallas_call(
        kernel,
        out_shape=(jax.ShapeDtypeStruct((T, B, H), out_dtype),
                   jax.ShapeDtypeStruct((T, B, H), out_dtype),
                   jax.ShapeDtypeStruct((2, B, H), out_dtype),
                   jax.ShapeDtypeStruct((2, B, H), out_dtype)),
        grid_spec=pltpu.PrefetchScalarGridSpec(
            num_scalar_prefetch=0,
            grid=(NC,),
            in_specs=[
                # forward gates: chunks front-to-back
                pl.BlockSpec((Tc, B, G), lambda c: (c, 0, 0)),
                # backward gates: chunks back-to-front (reversal via index_map,
                # no HBM copy)
                pl.BlockSpec((Tc, B, G), lambda c, nc=NC: (nc - 1 - c, 0, 0)),
                # loop-invariant recurrent weights, resident in VMEM
                pl.BlockSpec((H, G), lambda c: (0, 0)),
                pl.BlockSpec((H, G), lambda c: (0, 0)),
            ],
            out_specs=(
                pl.BlockSpec((Tc, B, H), lambda c: (c, 0, 0)),
                pl.BlockSpec((Tc, B, H), lambda c, nc=NC: (nc - 1 - c, 0, 0)),
                pl.BlockSpec((2, B, H), lambda c: (0, 0, 0)),
                pl.BlockSpec((2, B, H), lambda c: (0, 0, 0)),
            ),
            scratch_shapes=[pltpu.VMEM((B, H), jnp.float32),
                            pltpu.VMEM((B, H), jnp.float32),
                            pltpu.VMEM((B, H), jnp.float32),
                            pltpu.VMEM((B, H), jnp.float32)]),
        compiler_params=pltpu.CompilerParams(
            dimension_semantics=("arbitrary",)),   # sequential recurrence
    )(gx_f, gx_b, whh_f_t, whh_b_t)
    return out_f, out_b, hN, cN


# --------------------------- Encoder wrapper ------------------------------ #

def _input_projection(parts, w_ih, b_ih, b_hh):
    """gates_x = concat(parts, -1) @ w_ih.T + b_ih + b_hh, without the concat.

    parts: list of [T, B, d_i] arrays (d_i sum to w_ih.shape[1]).
    Returns [T, B, 4H] float32.
    """
    T, B = parts[0].shape[:2]
    G = w_ih.shape[0]                                    # 4H
    acc = None
    off = 0
    for p in parts:
        d = p.shape[-1]
        w_t = jnp.transpose(w_ih[:, off:off + d]).astype(jnp.float32)   # [d, 4H]
        contrib = jnp.dot(p.reshape(T * B, d).astype(jnp.float32), w_t,
                          preferred_element_type=jnp.float32)
        acc = contrib if acc is None else acc + contrib
        off += d
    acc = acc + (b_ih + b_hh).astype(jnp.float32)
    return acc.reshape(T, B, G)


def init_bilstm_params(key, input_size, hidden_size, num_layers):
    """Matches nn.LSTM(..., bidirectional=True) param shapes; hidden_size is
    the *encoder* hidden_size, halved per direction like BiLSTMEncoder."""
    H = hidden_size // 2
    k = 1.0 / jnp.sqrt(jnp.float32(H))
    params = []
    in_dim = input_size
    for _ in range(num_layers):
        layer = []
        for _direction in range(2):
            key, *ks = jax.random.split(key, 5)
            w_ih = jax.random.uniform(ks[0], (4 * H, in_dim), jnp.float32, -k, k)
            w_hh = jax.random.uniform(ks[1], (4 * H, H), jnp.float32, -k, k)
            b_ih = jax.random.uniform(ks[2], (4 * H,), jnp.float32, -k, k)
            b_hh = jax.random.uniform(ks[3], (4 * H,), jnp.float32, -k, k)
            layer += [w_ih, w_hh, b_ih, b_hh]
        params.append(tuple(layer))
        in_dim = 2 * H
    return params


def bilstm_encoder_forward(x, params, num_layers, seq_len=None, time_chunk=None):
    """Equivalent of BiLSTMEncoder.forward(input, seq_len) -> self.bilstm(input).

    x: [B, T, D].  seq_len is accepted but ignored (matching the module's
    forward, which does not pack).  Returns (output [B, T, 2H], (h_n, c_n))
    with h_n / c_n of shape [num_layers * 2, B, H] in PyTorch ordering
    (layer0_fwd, layer0_bwd, layer1_fwd, ...).
    """
    del seq_len
    x_tm = jnp.transpose(x, (1, 0, 2)).astype(jnp.float32)   # [T, B, D]
    parts = [x_tm]
    h_list, c_list = [], []
    for l in range(num_layers):
        (w_ih_f, w_hh_f, b_ih_f, b_hh_f,
         w_ih_b, w_hh_b, b_ih_b, b_hh_b) = params[l]
        # Hoisted, MXU-friendly input projections (no serial dependence).
        gx_f = _input_projection(parts, w_ih_f, b_ih_f, b_hh_f)
        gx_b = _input_projection(parts, w_ih_b, b_ih_b, b_hh_b)
        out_f, out_b, hN, cN = bilstm_layer(
            gx_f, gx_b, w_hh_f, w_hh_b,
            out_dtype=x.dtype, time_chunk=time_chunk)
        parts = [out_f, out_b]        # next layer consumes the halves directly
        h_list += [hN[0], hN[1]]
        c_list += [cN[0], cN[1]]
        # TODO(synk): inter-layer dropout (only active in training mode) is not
        # applied; this matches eval-mode forward semantics.
    output = jnp.concatenate(parts, axis=-1)        # single concat at the end
    output = jnp.transpose(output, (1, 0, 2))       # [B, T, 2H]
    h_n = jnp.stack(h_list, axis=0)
    c_n = jnp.stack(c_list, axis=0)
    return output, (h_n, c_n)


# ------------------------- Pure-JAX reference ------------------------------ #

def _lstm_dir_ref(x_tbd, w_ih, w_hh, b_ih, b_hh):
    T, B, D = x_tbd.shape
    H = w_hh.shape[1]

    def step(carry, x_t):
        h, c = carry
        gates = x_t @ w_ih.T + b_ih + h @ w_hh.T + b_hh
        i, f, g, o = jnp.split(gates, 4, axis=-1)
        c = jax.nn.sigmoid(f) * c + jax.nn.sigmoid(i) * jnp.tanh(g)
        h = jax.nn.sigmoid(o) * jnp.tanh(c)
        return (h, c), h

    init = (jnp.zeros((B, H), jnp.float32), jnp.zeros((B, H), jnp.float32))
    (hN, cN), out = jax.lax.scan(step, init, x_tbd)
    return out, hN, cN


def bilstm_encoder_ref(x, params, num_layers):
    x_tm = jnp.transpose(x, (1, 0, 2))
    layer_in = x_tm
    h_list, c_list = [], []
    for l in range(num_layers):
        (w_ih_f, w_hh_f, b_ih_f, b_hh_f,
         w_ih_b, w_hh_b, b_ih_b, b_hh_b) = params[l]
        out_f, hf, cf = _lstm_dir_ref(layer_in, w_ih_f, w_hh_f, b_ih_f, b_hh_f)
        out_b, hb, cb = _lstm_dir_ref(layer_in[::-1], w_ih_b, w_hh_b, b_ih_b, b_hh_b)
        out_b = out_b[::-1]
        layer_in = jnp.concatenate([out_f, out_b], axis=-1)
        h_list += [hf, hb]
        c_list += [cf, cb]
    return (jnp.transpose(layer_in, (1, 0, 2)),
            (jnp.stack(h_list, 0), jnp.stack(c_list, 0)))


# ---------------------------------- main ----------------------------------- #

if __name__ == "__main__":
    B, T = 2, 8            # batch, sequence length
    input_size = 16        # emb_size
    hidden_size = 32       # encoder hidden dim (per-direction H = 16)
    num_layers = 2

    key = jax.random.PRNGKey(0)
    k_in, k_param = jax.random.split(key)
    x = jax.random.normal(k_in, (B, T, input_size), jnp.float32)
    seq_len = jnp.full((B,), T, jnp.int32)   # forward() ignores seq_len

    params = init_bilstm_params(k_param, input_size, hidden_size, num_layers)

    out, (h_n, c_n) = bilstm_encoder_forward(x, params, num_layers, seq_len)
    out = jax.block_until_ready(out)
    h_n = jax.block_until_ready(h_n)
    c_n = jax.block_until_ready(c_n)

    out_r, (h_r, c_r) = bilstm_encoder_ref(x, params, num_layers)
    assert out.shape == (B, T, hidden_size)
    assert h_n.shape == (num_layers * 2, B, hidden_size // 2)
    assert c_n.shape == (num_layers * 2, B, hidden_size // 2)
    assert jnp.allclose(out, out_r, atol=1e-5, rtol=1e-5)
    assert jnp.allclose(h_n, h_r, atol=1e-5, rtol=1e-5)
    assert jnp.allclose(c_n, c_r, atol=1e-5, rtol=1e-5)

    print("KERNEL_OK")
</pallas_src>

<mosaic_0001>
module attributes {stable_mosaic.version = 11 : i64} {
  func.func @_bilstm_rec_kernel(%arg0: i32, %arg1: memref<8x2x64xf32, #tpu.memory_space<vmem>>, %arg2: memref<8x2x64xf32, #tpu.memory_space<vmem>>, %arg3: memref<16x64xf32, #tpu.memory_space<vmem>>, %arg4: memref<16x64xf32, #tpu.memory_space<vmem>>, %arg5: memref<8x2x16xf32, #tpu.memory_space<vmem>>, %arg6: memref<8x2x16xf32, #tpu.memory_space<vmem>>, %arg7: memref<2x2x16xf32, #tpu.memory_space<vmem>>, %arg8: memref<2x2x16xf32, #tpu.memory_space<vmem>>, %arg9: memref<2x16xf32, #tpu.memory_space<vmem>>, %arg10: memref<2x16xf32, #tpu.memory_space<vmem>>, %arg11: memref<2x16xf32, #tpu.memory_space<vmem>>, %arg12: memref<2x16xf32, #tpu.memory_space<vmem>>) attributes {dimension_semantics = [#tpu.dimension_semantics<arbitrary>], iteration_bounds = array<i64: 1>, scalar_prefetch = 0 : i64, scratch_operands = 4 : i64, tpu.core_type = #tpu.core_type<tc>, window_params = [{transform_indices = @transform_0, window_bounds = array<i64: 8, 2, 64>}, {transform_indices = @transform_1, window_bounds = array<i64: 8, 2, 64>}, {pipeline_mode = #tpu.pipeline_mode<synchronous>, transform_indices = @transform_2, window_bounds = array<i64: 16, 64>}, {pipeline_mode = #tpu.pipeline_mode<synchronous>, transform_indices = @transform_3, window_bounds = array<i64: 16, 64>}, {transform_indices = @transform_4, window_bounds = array<i64: 8, 2, 16>}, {transform_indices = @transform_5, window_bounds = array<i64: 8, 2, 16>}, {pipeline_mode = #tpu.pipeline_mode<synchronous>, transform_indices = @transform_6, window_bounds = array<i64: 2, 2, 16>}, {pipeline_mode = #tpu.pipeline_mode<synchronous>, transform_indices = @transform_7, window_bounds = array<i64: 2, 2, 16>}]} {
    %c0_i32 = arith.constant 0 : i32
    %0 = arith.cmpi eq, %arg0, %c0_i32 : i32
    %1 = arith.extui %0 : i1 to i32
    %c0_i32_0 = arith.constant 0 : i32
    %2 = arith.cmpi ne, %1, %c0_i32_0 : i32
    scf.if %2 {
      %cst_167 = arith.constant 0.000000e+00 : f32
      %577 = vector.broadcast %cst_167 : f32 to vector<2x16xf32>
      %c0_168 = arith.constant 0 : index
      %c0_169 = arith.constant 0 : index
      %578 = vector.load %arg9[%c0_168, %c0_169] : memref<2x16xf32, #tpu.memory_space<vmem>>, vector<2x16xf32>
      tpu.vector_store %arg9[%c0_168, %c0_169], %577 {strides = array<i32>} : memref<2x16xf32, #tpu.memory_space<vmem>>, vector<2x16xf32>,
      %cst_170 = arith.constant 0.000000e+00 : f32
      %579 = vector.broadcast %cst_170 : f32 to vector<2x16xf32>
      %c0_171 = arith.constant 0 : index
      %c0_172 = arith.constant 0 : index
      %580 = vector.load %arg10[%c0_171, %c0_172] : memref<2x16xf32, #tpu.memory_space<vmem>>, vector<2x16xf32>
      tpu.vector_store %arg10[%c0_171, %c0_172], %579 {strides = array<i32>} : memref<2x16xf32, #tpu.memory_space<vmem>>, vector<2x16xf32>,
      %cst_173 = arith.constant 0.000000e+00 : f32
      %581 = vector.broadcast %cst_173 : f32 to vector<2x16xf32>
      %c0_174 = arith.constant 0 : index
      %c0_175 = arith.constant 0 : index
      %582 = vector.load %arg11[%c0_174, %c0_175] : memref<2x16xf32, #tpu.memory_space<vmem>>, vector<2x16xf32>
      tpu.vector_store %arg11[%c0_174, %c0_175], %581 {strides = array<i32>} : memref<2x16xf32, #tpu.memory_space<vmem>>, vector<2x16xf32>,
      %cst_176 = arith.constant 0.000000e+00 : f32
      %583 = vector.broadcast %cst_176 : f32 to vector<2x16xf32>
      %c0_177 = arith.constant 0 : index
      %c0_178 = arith.constant 0 : index
      %584 = vector.load %arg12[%c0_177, %c0_178] : memref<2x16xf32, #tpu.memory_space<vmem>>, vector<2x16xf32>
      tpu.vector_store %arg12[%c0_177, %c0_178], %583 {strides = array<i32>} : memref<2x16xf32, #tpu.memory_space<vmem>>, vector<2x16xf32>,
    } else {
    }
    %c0 = arith.constant 0 : index
    %c0_1 = arith.constant 0 : index
    %3 = vector.load %arg3[%c0, %c0_1] : memref<16x64xf32, #tpu.memory_space<vmem>>, vector<16x64xf32>
    %c0_2 = arith.constant 0 : index
    %c0_3 = arith.constant 0 : index
    %4 = vector.load %arg4[%c0_2, %c0_3] : memref<16x64xf32, #tpu.memory_space<vmem>>, vector<16x64xf32>
    %c0_4 = arith.constant 0 : index
    %c0_5 = arith.constant 0 : index
    %5 = vector.load %arg9[%c0_4, %c0_5] : memref<2x16xf32, #tpu.memory_space<vmem>>, vector<2x16xf32>
    %c0_6 = arith.constant 0 : index
    %c0_7 = arith.constant 0 : index
    %6 = vector.load %arg10[%c0_6, %c0_7] : memref<2x16xf32, #tpu.memory_space<vmem>>, vector<2x16xf32>
    %c0_8 = arith.constant 0 : index
    %c0_9 = arith.constant 0 : index
    %7 = vector.load %arg11[%c0_8, %c0_9] : memref<2x16xf32, #tpu.memory_space<vmem>>, vector<2x16xf32>
    %c0_10 = arith.constant 0 : index
    %c0_11 = arith.constant 0 : index
    %8 = vector.load %arg12[%c0_10, %c0_11] : memref<2x16xf32, #tpu.memory_space<vmem>>, vector<2x16xf32>
    %c0_i32_12 = arith.constant 0 : i32
    %9 = arith.index_cast %c0_i32_12 : i32 to index
    %c0_13 = arith.constant 0 : index
    %c0_14 = arith.constant 0 : index
    %10 = vector.load %arg1[%9, %c0_13, %c0_14] : memref<8x2x64xf32, #tpu.memory_space<vmem>>, vector<1x2x64xf32>
    %11 = vector.shape_cast %10 : vector<1x2x64xf32> to vector<2x64xf32>
    %cst = arith.constant dense<0.000000e+00> : vector<2x64xf32>
    %12 = tpu.matmul %5, %3, %cst {dimension_numbers = #tpu.dot_dimension_numbers<[1], [0], [0], [1], [0, 0, 1, 1], [], []>} : vector<2x16xf32>, vector<16x64xf32>, vector<2x64xf32> -> vector<2x64xf32>
    %13 = arith.addf %11, %12 : vector<2x64xf32>
    %14 = vector.extract_strided_slice %13 {offsets = [0, 0], sizes = [2, 16], strides = [1, 1]} : vector<2x64xf32> to vector<2x16xf32>
    %15 = arith.negf %14 : vector<2x16xf32>
    %16 = math.exp %15 : vector<2x16xf32>
    %cst_15 = arith.constant 1.000000e+00 : f32
    %17 = vector.broadcast %cst_15 : f32 to vector<2x16xf32>
    %18 = arith.addf %17, %16 : vector<2x16xf32>
    %19 = arith.divf %17, %18 : vector<2x16xf32>
    %20 = vector.extract_strided_slice %13 {offsets = [0, 16], sizes = [2, 16], strides = [1, 1]} : vector<2x64xf32> to vector<2x16xf32>
    %21 = arith.negf %20 : vector<2x16xf32>
    %22 = math.exp %21 : vector<2x16xf32>
    %cst_16 = arith.constant 1.000000e+00 : f32
    %23 = vector.broadcast %cst_16 : f32 to vector<2x16xf32>
    %24 = arith.addf %23, %22 : vector<2x16xf32>
    %25 = arith.divf %23, %24 : vector<2x16xf32>
    %26 = vector.extract_strided_slice %13 {offsets = [0, 32], sizes = [2, 16], strides = [1, 1]} : vector<2x64xf32> to vector<2x16xf32>
    %27 = math.tanh %26 : vector<2x16xf32>
    %28 = vector.extract_strided_slice %13 {offsets = [0, 48], sizes = [2, 16], strides = [1, 1]} : vector<2x64xf32> to vector<2x16xf32>
    %29 = arith.negf %28 : vector<2x16xf32>
    %30 = math.exp %29 : vector<2x16xf32>
    %cst_17 = arith.constant 1.000000e+00 : f32
    %31 = vector.broadcast %cst_17 : f32 to vector<2x16xf32>
    %32 = arith.addf %31, %30 : vector<2x16xf32>
    %33 = arith.divf %31, %32 : vector<2x16xf32>
    %34 = arith.mulf %25, %6 : vector<2x16xf32>
    %35 = arith.mulf %19, %27 : vector<2x16xf32>
    %36 = arith.addf %34, %35 : vector<2x16xf32>
    %37 = math.tanh %36 : vector<2x16xf32>
    %38 = arith.mulf %33, %37 : vector<2x16xf32>
    %39 = arith.index_cast %c0_i32_12 : i32 to index
    %c0_18 = arith.constant 0 : index
    %c0_19 = arith.constant 0 : index
    %40 = vector.load %arg5[%39, %c0_18, %c0_19] : memref<8x2x16xf32, #tpu.memory_space<vmem>>, vector<1x2x16xf32>
    %41 = vector.shape_cast %40 : vector<1x2x16xf32> to vector<2x16xf32>
    %42 = vector.shape_cast %38 : vector<2x16xf32> to vector<1x2x16xf32>
    tpu.vector_store %arg5[%39, %c0_18, %c0_19], %42 {strides = array<i32>} : memref<8x2x16xf32, #tpu.memory_space<vmem>>, vector<1x2x16xf32>,
    %c7_i32 = arith.constant 7 : i32
    %43 = arith.subi %c7_i32, %c0_i32_12 : i32
    %44 = arith.index_cast %43 : i32 to index
    %c0_20 = arith.constant 0 : index
    %c0_21 = arith.constant 0 : index
    %45 = vector.load %arg2[%44, %c0_20, %c0_21] : memref<8x2x64xf32, #tpu.memory_space<vmem>>, vector<1x2x64xf32>
    %46 = vector.shape_cast %45 : vector<1x2x64xf32> to vector<2x64xf32>
    %cst_22 = arith.constant dense<0.000000e+00> : vector<2x64xf32>
    %47 = tpu.matmul %7, %4, %cst_22 {dimension_numbers = #tpu.dot_dimension_numbers<[1], [0], [0], [1], [0, 0, 1, 1], [], []>} : vector<2x16xf32>, vector<16x64xf32>, vector<2x64xf32> -> vector<2x64xf32>
    %48 = arith.addf %46, %47 : vector<2x64xf32>
    %49 = vector.extract_strided_slice %48 {offsets = [0, 0], sizes = [2, 16], strides = [1, 1]} : vector<2x64xf32> to vector<2x16xf32>
    %50 = arith.negf %49 : vector<2x16xf32>
    %51 = math.exp %50 : vector<2x16xf32>
    %cst_23 = arith.constant 1.000000e+00 : f32
    %52 = vector.broadcast %cst_23 : f32 to vector<2x16xf32>
    %53 = arith.addf %52, %51 : vector<2x16xf32>
    %54 = arith.divf %52, %53 : vector<2x16xf32>
    %55 = vector.extract_strided_slice %48 {offsets = [0, 16], sizes = [2, 16], strides = [1, 1]} : vector<2x64xf32> to vector<2x16xf32>
    %56 = arith.negf %55 : vector<2x16xf32>
    %57 = math.exp %56 : vector<2x16xf32>
    %cst_24 = arith.constant 1.000000e+00 : f32
    %58 = vector.broadcast %cst_24 : f32 to vector<2x16xf32>
    %59 = arith.addf %58, %57 : vector<2x16xf32>
    %60 = arith.divf %58, %59 : vector<2x16xf32>
    %61 = vector.extract_strided_slice %48 {offsets = [0, 32], sizes = [2, 16], strides = [1, 1]} : vector<2x64xf32> to vector<2x16xf32>
    %62 = math.tanh %61 : vector<2x16xf32>
    %63 = vector.extract_strided_slice %48 {offsets = [0, 48], sizes = [2, 16], strides = [1, 1]} : vector<2x64xf32> to vector<2x16xf32>
    %64 = arith.negf %63 : vector<2x16xf32>
    %65 = math.exp %64 : vector<2x16xf32>
    %cst_25 = arith.constant 1.000000e+00 : f32
    %66 = vector.broadcast %cst_25 : f32 to vector<2x16xf32>
    %67 = arith.addf %66, %65 : vector<2x16xf32>
    %68 = arith.divf %66, %67 : vector<2x16xf32>
    %69 = arith.mulf %60, %8 : vector<2x16xf32>
    %70 = arith.mulf %54, %62 : vector<2x16xf32>
    %71 = arith.addf %69, %70 : vector<2x16xf32>
    %72 = math.tanh %71 : vector<2x16xf32>
    %73 = arith.mulf %68, %72 : vector<2x16xf32>
    %74 = arith.index_cast %43 : i32 to index
    %c0_26 = arith.constant 0 : index
    %c0_27 = arith.constant 0 : index
    %75 = vector.load %arg6[%74, %c0_26, %c0_27] : memref<8x2x16xf32, #tpu.memory_space<vmem>>, vector<1x2x16xf32>
    %76 = vector.shape_cast %75 : vector<1x2x16xf32> to vector<2x16xf32>
    %77 = vector.shape_cast %73 : vector<2x16xf32> to vector<1x2x16xf32>
    tpu.vector_store %arg6[%74, %c0_26, %c0_27], %77 {strides = array<i32>} : memref<8x2x16xf32, #tpu.memory_space<vmem>>, vector<1x2x16xf32>,
    %c1_i32 = arith.constant 1 : i32
    %78 = arith.index_cast %c1_i32 : i32 to index
    %c0_28 = arith.constant 0 : index
    %c0_29 = arith.constant 0 : index
    %79 = vector.load %arg1[%78, %c0_28, %c0_29] : memref<8x2x64xf32, #tpu.memory_space<vmem>>, vector<1x2x64xf32>
    %80 = vector.shape_cast %79 : vector<1x2x64xf32> to vector<2x64xf32>
    %cst_30 = arith.constant dense<0.000000e+00> : vector<2x64xf32>
    %81 = tpu.matmul %38, %3, %cst_30 {dimension_numbers = #tpu.dot_dimension_numbers<[1], [0], [0], [1], [0, 0, 1, 1], [], []>} : vector<2x16xf32>, vector<16x64xf32>, vector<2x64xf32> -> vector<2x64xf32>
    %82 = arith.addf %80, %81 : vector<2x64xf32>
    %83 = vector.extract_strided_slice %82 {offsets = [0, 0], sizes = [2, 16], strides = [1, 1]} : vector<2x64xf32> to vector<2x16xf32>
    %84 = arith.negf %83 : vector<2x16xf32>
    %85 = math.exp %84 : vector<2x16xf32>
    %cst_31 = arith.constant 1.000000e+00 : f32
    %86 = vector.broadcast %cst_31 : f32 to vector<2x16xf32>
    %87 = arith.addf %86, %85 : vector<2x16xf32>
    %88 = arith.divf %86, %87 : vector<2x16xf32>
    %89 = vector.extract_strided_slice %82 {offsets = [0, 16], sizes = [2, 16], strides = [1, 1]} : vector<2x64xf32> to vector<2x16xf32>
    %90 = arith.negf %89 : vector<2x16xf32>
    %91 = math.exp %90 : vector<2x16xf32>
    %cst_32 = arith.constant 1.000000e+00 : f32
    %92 = vector.broadcast %cst_32 : f32 to vector<2x16xf32>
    %93 = arith.addf %92, %91 : vector<2x16xf32>
    %94 = arith.divf %92, %93 : vector<2x16xf32>
    %95 = vector.extract_strided_slice %82 {offsets = [0, 32], sizes = [2, 16], strides = [1, 1]} : vector<2x64xf32> to vector<2x16xf32>
    %96 = math.tanh %95 : vector<2x16xf32>
    %97 = vector.extract_strided_slice %82 {offsets = [0, 48], sizes = [2, 16], strides = [1, 1]} : vector<2x64xf32> to vector<2x16xf32>
    %98 = arith.negf %97 : vector<2x16xf32>
    %99 = math.exp %98 : vector<2x16xf32>
    %cst_33 = arith.constant 1.000000e+00 : f32
    %100 = vector.broadcast %cst_33 : f32 to vector<2x16xf32>
    %101 = arith.addf %100, %99 : vector<2x16xf32>
    %102 = arith.divf %100, %101 : vector<2x16xf32>
    %103 = arith.mulf %94, %36 : vector<2x16xf32>
    %104 = arith.mulf %88, %96 : vector<2x16xf32>
    %105 = arith.addf %103, %104 : vector<2x16xf32>
    %106 = math.tanh %105 : vector<2x16xf32>
    %107 = arith.mulf %102, %106 : vector<2x16xf32>
    %108 = arith.index_cast %c1_i32 : i32 to index
    %c0_34 = arith.constant 0 : index
    %c0_35 = arith.constant 0 : index
    %109 = vector.load %arg5[%108, %c0_34, %c0_35] : memref<8x2x16xf32, #tpu.memory_space<vmem>>, vector<1x2x16xf32>
    %110 = vector.shape_cast %109 : vector<1x2x16xf32> to vector<2x16xf32>
    %111 = vector.shape_cast %107 : vector<2x16xf32> to vector<1x2x16xf32>
    tpu.vector_store %arg5[%108, %c0_34, %c0_35], %111 {strides = array<i32>} : memref<8x2x16xf32, #tpu.memory_space<vmem>>, vector<1x2x16xf32>,
    %c7_i32_36 = arith.constant 7 : i32
    %112 = arith.subi %c7_i32_36, %c1_i32 : i32
    %113 = arith.index_cast %112 : i32 to index
    %c0_37 = arith.constant 0 : index
    %c0_38 = arith.constant 0 : index
    %114 = vector.load %arg2[%113, %c0_37, %c0_38] : memref<8x2x64xf32, #tpu.memory_space<vmem>>, vector<1x2x64xf32>
    %115 = vector.shape_cast %114 : vector<1x2x64xf32> to vector<2x64xf32>
    %cst_39 = arith.constant dense<0.000000e+00> : vector<2x64xf32>
    %116 = tpu.matmul %73, %4, %cst_39 {dimension_numbers = #tpu.dot_dimension_numbers<[1], [0], [0], [1], [0, 0, 1, 1], [], []>} : vector<2x16xf32>, vector<16x64xf32>, vector<2x64xf32> -> vector<2x64xf32>
    %117 = arith.addf %115, %116 : vector<2x64xf32>
    %118 = vector.extract_strided_slice %117 {offsets = [0, 0], sizes = [2, 16], strides = [1, 1]} : vector<2x64xf32> to vector<2x16xf32>
    %119 = arith.negf %118 : vector<2x16xf32>
    %120 = math.exp %119 : vector<2x16xf32>
    %cst_40 = arith.constant 1.000000e+00 : f32
    %121 = vector.broadcast %cst_40 : f32 to vector<2x16xf32>
    %122 = arith.addf %121, %120 : vector<2x16xf32>
    %123 = arith.divf %121, %122 : vector<2x16xf32>
    %124 = vector.extract_strided_slice %117 {offsets = [0, 16], sizes = [2, 16], strides = [1, 1]} : vector<2x64xf32> to vector<2x16xf32>
    %125 = arith.negf %124 : vector<2x16xf32>
    %126 = math.exp %125 : vector<2x16xf32>
    %cst_41 = arith.constant 1.000000e+00 : f32
    %127 = vector.broadcast %cst_41 : f32 to vector<2x16xf32>
    %128 = arith.addf %127, %126 : vector<2x16xf32>
    %129 = arith.divf %127, %128 : vector<2x16xf32>
    %130 = vector.extract_strided_slice %117 {offsets = [0, 32], sizes = [2, 16], strides = [1, 1]} : vector<2x64xf32> to vector<2x16xf32>
    %131 = math.tanh %130 : vector<2x16xf32>
    %132 = vector.extract_strided_slice %117 {offsets = [0, 48], sizes = [2, 16], strides = [1, 1]} : vector<2x64xf32> to vector<2x16xf32>
    %133 = arith.negf %132 : vector<2x16xf32>
    %134 = math.exp %133 : vector<2x16xf32>
    %cst_42 = arith.constant 1.000000e+00 : f32
    %135 = vector.broadcast %cst_42 : f32 to vector<2x16xf32>
    %136 = arith.addf %135, %134 : vector<2x16xf32>
    %137 = arith.divf %135, %136 : vector<2x16xf32>
    %138 = arith.mulf %129, %71 : vector<2x16xf32>
    %139 = arith.mulf %123, %131 : vector<2x16xf32>
    %140 = arith.addf %138, %139 : vector<2x16xf32>
    %141 = math.tanh %140 : vector<2x16xf32>
    %142 = arith.mulf %137, %141 : vector<2x16xf32>
    %143 = arith.index_cast %112 : i32 to index
    %c0_43 = arith.constant 0 : index
    %c0_44 = arith.constant 0 : index
    %144 = vector.load %arg6[%143, %c0_43, %c0_44] : memref<8x2x16xf32, #tpu.memory_space<vmem>>, vector<1x2x16xf32>
    %145 = vector.shape_cast %144 : vector<1x2x16xf32> to vector<2x16xf32>
    %146 = vector.shape_cast %142 : vector<2x16xf32> to vector<1x2x16xf32>
    tpu.vector_store %arg6[%143, %c0_43, %c0_44], %146 {strides = array<i32>} : memref<8x2x16xf32, #tpu.memory_space<vmem>>, vector<1x2x16xf32>,
    %c2_i32 = arith.constant 2 : i32
    %147 = arith.index_cast %c2_i32 : i32 to index
    %c0_45 = arith.constant 0 : index
    %c0_46 = arith.constant 0 : index
    %148 = vector.load %arg1[%147, %c0_45, %c0_46] : memref<8x2x64xf32, #tpu.memory_space<vmem>>, vector<1x2x64xf32>
    %149 = vector.shape_cast %148 : vector<1x2x64xf32> to vector<2x64xf32>
    %cst_47 = arith.constant dense<0.000000e+00> : vector<2x64xf32>
    %150 = tpu.matmul %107, %3, %cst_47 {dimension_numbers = #tpu.dot_dimension_numbers<[1], [0], [0], [1], [0, 0, 1, 1], [], []>} : vector<2x16xf32>, vector<16x64xf32>, vector<2x64xf32> -> vector<2x64xf32>
    %151 = arith.addf %149, %150 : vector<2x64xf32>
    %152 = vector.extract_strided_slice %151 {offsets = [0, 0], sizes = [2, 16], strides = [1, 1]} : vector<2x64xf32> to vector<2x16xf32>
    %153 = arith.negf %152 : vector<2x16xf32>
    %154 = math.exp %153 : vector<2x16xf32>
    %cst_48 = arith.constant 1.000000e+00 : f32
    %155 = vector.broadcast %cst_48 : f32 to vector<2x16xf32>
    %156 = arith.addf %155, %154 : vector<2x16xf32>
    %157 = arith.divf %155, %156 : vector<2x16xf32>
    %158 = vector.extract_strided_slice %151 {offsets = [0, 16], sizes = [2, 16], strides = [1, 1]} : vector<2x64xf32> to vector<2x16xf32>
    %159 = arith.negf %158 : vector<2x16xf32>
    %160 = math.exp %159 : vector<2x16xf32>
    %cst_49 = arith.constant 1.000000e+00 : f32
    %161 = vector.broadcast %cst_49 : f32 to vector<2x16xf32>
    %162 = arith.addf %161, %160 : vector<2x16xf32>
    %163 = arith.divf %161, %162 : vector<2x16xf32>
    %164 = vector.extract_strided_slice %151 {offsets = [0, 32], sizes = [2, 16], strides = [1, 1]} : vector<2x64xf32> to vector<2x16xf32>
    %165 = math.tanh %164 : vector<2x16xf32>
    %166 = vector.extract_strided_slice %151 {offsets = [0, 48], sizes = [2, 16], strides = [1, 1]} : vector<2x64xf32> to vector<2x16xf32>
    %167 = arith.negf %166 : vector<2x16xf32>
    %168 = math.exp %167 : vector<2x16xf32>
    %cst_50 = arith.constant 1.000000e+00 : f32
    %169 = vector.broadcast %cst_50 : f32 to vector<2x16xf32>
    %170 = arith.addf %169, %168 : vector<2x16xf32>
    %171 = arith.divf %169, %170 : vector<2x16xf32>
    %172 = arith.mulf %163, %105 : vector<2x16xf32>
    %173 = arith.mulf %157, %165 : vector<2x16xf32>
    %174 = arith.addf %172, %173 : vector<2x16xf32>
    %175 = math.tanh %174 : vector<2x16xf32>
    %176 = arith.mulf %171, %175 : vector<2x16xf32>
    %177 = arith.index_cast %c2_i32 : i32 to index
    %c0_51 = arith.constant 0 : index
    %c0_52 = arith.constant 0 : index
    %178 = vector.load %arg5[%177, %c0_51, %c0_52] : memref<8x2x16xf32, #tpu.memory_space<vmem>>, vector<1x2x16xf32>
    %179 = vector.shape_cast %178 : vector<1x2x16xf32> to vector<2x16xf32>
    %180 = vector.shape_cast %176 : vector<2x16xf32> to vector<1x2x16xf32>
    tpu.vector_store %arg5[%177, %c0_51, %c0_52], %180 {strides = array<i32>} : memref<8x2x16xf32, #tpu.memory_space<vmem>>, vector<1x2x16xf32>,
    %c7_i32_53 = arith.constant 7 : i32
    %181 = arith.subi %c7_i32_53, %c2_i32 : i32
    %182 = arith.index_cast %181 : i32 to index
    %c0_54 = arith.constant 0 : index
    %c0_55 = arith.constant 0 : index
    %183 = vector.load %arg2[%182, %c0_54, %c0_55] : memref<8x2x64xf32, #tpu.memory_space<vmem>>, vector<1x2x64xf32>
    %184 = vector.shape_cast %183 : vector<1x2x64xf32> to vector<2x64xf32>
    %cst_56 = arith.constant dense<0.000000e+00> : vector<2x64xf32>
    %185 = tpu.matmul %142, %4, %cst_56 {dimension_numbers = #tpu.dot_dimension_numbers<[1], [0], [0], [1], [0, 0, 1, 1], [], []>} : vector<2x16xf32>, vector<16x64xf32>, vector<2x64xf32> -> vector<2x64xf32>
    %186 = arith.addf %184, %185 : vector<2x64xf32>
    %187 = vector.extract_strided_slice %186 {offsets = [0, 0], sizes = [2, 16], strides = [1, 1]} : vector<2x64xf32> to vector<2x16xf32>
    %188 = arith.negf %187 : vector<2x16xf32>
    %189 = math.exp %188 : vector<2x16xf32>
    %cst_57 = arith.constant 1.000000e+00 : f32
    %190 = vector.broadcast %cst_57 : f32 to vector<2x16xf32>
    %191 = arith.addf %190, %189 : vector<2x16xf32>
    %192 = arith.divf %190, %191 : vector<2x16xf32>
    %193 = vector.extract_strided_slice %186 {offsets = [0, 16], sizes = [2, 16], strides = [1, 1]} : vector<2x64xf32> to vector<2x16xf32>
    %194 = arith.negf %193 : vector<2x16xf32>
    %195 = math.exp %194 : vector<2x16xf32>
    %cst_58 = arith.constant 1.000000e+00 : f32
    %196 = vector.broadcast %cst_58 : f32 to vector<2x16xf32>
    %197 = arith.addf %196, %195 : vector<2x16xf32>
    %198 = arith.divf %196, %197 : vector<2x16xf32>
    %199 = vector.extract_strided_slice %186 {offsets = [0, 32], sizes = [2, 16], strides = [1, 1]} : vector<2x64xf32> to vector<2x16xf32>
    %200 = math.tanh %199 : vector<2x16xf32>
    %201 = vector.extract_strided_slice %186 {offsets = [0, 48], sizes = [2, 16], strides = [1, 1]} : vector<2x64xf32> to vector<2x16xf32>
    %202 = arith.negf %201 : vector<2x16xf32>
    %203 = math.exp %202 : vector<2x16xf32>
    %cst_59 = arith.constant 1.000000e+00 : f32
    %204 = vector.broadcast %cst_59 : f32 to vector<2x16xf32>
    %205 = arith.addf %204, %203 : vector<2x16xf32>
    %206 = arith.divf %204, %205 : vector<2x16xf32>
    %207 = arith.mulf %198, %140 : vector<2x16xf32>
    %208 = arith.mulf %192, %200 : vector<2x16xf32>
    %209 = arith.addf %207, %208 : vector<2x16xf32>
    %210 = math.tanh %209 : vector<2x16xf32>
    %211 = arith.mulf %206, %210 : vector<2x16xf32>
    %212 = arith.index_cast %181 : i32 to index
    %c0_60 = arith.constant 0 : index
    %c0_61 = arith.constant 0 : index
    %213 = vector.load %arg6[%212, %c0_60, %c0_61] : memref<8x2x16xf32, #tpu.memory_space<vmem>>, vector<1x2x16xf32>
    %214 = vector.shape_cast %213 : vector<1x2x16xf32> to vector<2x16xf32>
    %215 = vector.shape_cast %211 : vector<2x16xf32> to vector<1x2x16xf32>
    tpu.vector_store %arg6[%212, %c0_60, %c0_61], %215 {strides = array<i32>} : memref<8x2x16xf32, #tpu.memory_space<vmem>>, vector<1x2x16xf32>,
    %c3_i32 = arith.constant 3 : i32
    %216 = arith.index_cast %c3_i32 : i32 to index
    %c0_62 = arith.constant 0 : index
    %c0_63 = arith.constant 0 : index
    %217 = vector.load %arg1[%216, %c0_62, %c0_63] : memref<8x2x64xf32, #tpu.memory_space<vmem>>, vector<1x2x64xf32>
    %218 = vector.shape_cast %217 : vector<1x2x64xf32> to vector<2x64xf32>
    %cst_64 = arith.constant dense<0.000000e+00> : vector<2x64xf32>
    %219 = tpu.matmul %176, %3, %cst_64 {dimension_numbers = #tpu.dot_dimension_numbers<[1], [0], [0], [1], [0, 0, 1, 1], [], []>} : vector<2x16xf32>, vector<16x64xf32>, vector<2x64xf32> -> vector<2x64xf32>
    %220 = arith.addf %218, %219 : vector<2x64xf32>
    %221 = vector.extract_strided_slice %220 {offsets = [0, 0], sizes = [2, 16], strides = [1, 1]} : vector<2x64xf32> to vector<2x16xf32>
    %222 = arith.negf %221 : vector<2x16xf32>
    %223 = math.exp %222 : vector<2x16xf32>
    %cst_65 = arith.constant 1.000000e+00 : f32
    %224 = vector.broadcast %cst_65 : f32 to vector<2x16xf32>
    %225 = arith.addf %224, %223 : vector<2x16xf32>
    %226 = arith.divf %224, %225 : vector<2x16xf32>
    %227 = vector.extract_strided_slice %220 {offsets = [0, 16], sizes = [2, 16], strides = [1, 1]} : vector<2x64xf32> to vector<2x16xf32>
    %228 = arith.negf %227 : vector<2x16xf32>
    %229 = math.exp %228 : vector<2x16xf32>
    %cst_66 = arith.constant 1.000000e+00 : f32
    %230 = vector.broadcast %cst_66 : f32 to vector<2x16xf32>
    %231 = arith.addf %230, %229 : vector<2x16xf32>
    %232 = arith.divf %230, %231 : vector<2x16xf32>
    %233 = vector.extract_strided_slice %220 {offsets = [0, 32], sizes = [2, 16], strides = [1, 1]} : vector<2x64xf32> to vector<2x16xf32>
    %234 = math.tanh %233 : vector<2x16xf32>
    %235 = vector.extract_strided_slice %220 {offsets = [0, 48], sizes = [2, 16], strides = [1, 1]} : vector<2x64xf32> to vector<2x16xf32>
    %236 = arith.negf %235 : vector<2x16xf32>
    %237 = math.exp %236 : vector<2x16xf32>
    %cst_67 = arith.constant 1.000000e+00 : f32
    %238 = vector.broadcast %cst_67 : f32 to vector<2x16xf32>
    %239 = arith.addf %238, %237 : vector<2x16xf32>
    %240 = arith.divf %238, %239 : vector<2x16xf32>
    %241 = arith.mulf %232, %174 : vector<2x16xf32>
    %242 = arith.mulf %226, %234 : vector<2x16xf32>
    %243 = arith.addf %241, %242 : vector<2x16xf32>
    %244 = math.tanh %243 : vector<2x16xf32>
    %245 = arith.mulf %240, %244 : vector<2x16xf32>
    %246 = arith.index_cast %c3_i32 : i32 to index
    %c0_68 = arith.constant 0 : index
    %c0_69 = arith.constant 0 : index
    %247 = vector.load %arg5[%246, %c0_68, %c0_69] : memref<8x2x16xf32, #tpu.memory_space<vmem>>, vector<1x2x16xf32>
    %248 = vector.shape_cast %247 : vector<1x2x16xf32> to vector<2x16xf32>
    %249 = vector.shape_cast %245 : vector<2x16xf32> to vector<1x2x16xf32>
    tpu.vector_store %arg5[%246, %c0_68, %c0_69], %249 {strides = array<i32>} : memref<8x2x16xf32, #tpu.memory_space<vmem>>, vector<1x2x16xf32>,
    %c7_i32_70 = arith.constant 7 : i32
    %250 = arith.subi %c7_i32_70, %c3_i32 : i32
    %251 = arith.index_cast %250 : i32 to index
    %c0_71 = arith.constant 0 : index
    %c0_72 = arith.constant 0 : index
    %252 = vector.load %arg2[%251, %c0_71, %c0_72] : memref<8x2x64xf32, #tpu.memory_space<vmem>>, vector<1x2x64xf32>
    %253 = vector.shape_cast %252 : vector<1x2x64xf32> to vector<2x64xf32>
    %cst_73 = arith.constant dense<0.000000e+00> : vector<2x64xf32>
    %254 = tpu.matmul %211, %4, %cst_73 {dimension_numbers = #tpu.dot_dimension_numbers<[1], [0], [0], [1], [0, 0, 1, 1], [], []>} : vector<2x16xf32>, vector<16x64xf32>, vector<2x64xf32> -> vector<2x64xf32>
    %255 = arith.addf %253, %254 : vector<2x64xf32>
    %256 = vector.extract_strided_slice %255 {offsets = [0, 0], sizes = [2, 16], strides = [1, 1]} : vector<2x64xf32> to vector<2x16xf32>
    %257 = arith.negf %256 : vector<2x16xf32>
    %258 = math.exp %257 : vector<2x16xf32>
    %cst_74 = arith.constant 1.000000e+00 : f32
    %259 = vector.broadcast %cst_74 : f32 to vector<2x16xf32>
    %260 = arith.addf %259, %258 : vector<2x16xf32>
    %261 = arith.divf %259, %260 : vector<2x16xf32>
    %262 = vector.extract_strided_slice %255 {offsets = [0, 16], sizes = [2, 16], strides = [1, 1]} : vector<2x64xf32> to vector<2x16xf32>
    %263 = arith.negf %262 : vector<2x16xf32>
    %264 = math.exp %263 : vector<2x16xf32>
    %cst_75 = arith.constant 1.000000e+00 : f32
    %265 = vector.broadcast %cst_75 : f32 to vector<2x16xf32>
    %266 = arith.addf %265, %264 : vector<2x16xf32>
    %267 = arith.divf %265, %266 : vector<2x16xf32>
    %268 = vector.extract_strided_slice %255 {offsets = [0, 32], sizes = [2, 16], strides = [1, 1]} : vector<2x64xf32> to vector<2x16xf32>
    %269 = math.tanh %268 : vector<2x16xf32>
    %270 = vector.extract_strided_slice %255 {offsets = [0, 48], sizes = [2, 16], strides = [1, 1]} : vector<2x64xf32> to vector<2x16xf32>
    %271 = arith.negf %270 : vector<2x16xf32>
    %272 = math.exp %271 : vector<2x16xf32>
    %cst_76 = arith.constant 1.000000e+00 : f32
    %273 = vector.broadcast %cst_76 : f32 to vector<2x16xf32>
    %274 = arith.addf %273, %272 : vector<2x16xf32>
    %275 = arith.divf %273, %274 : vector<2x16xf32>
    %276 = arith.mulf %267, %209 : vector<2x16xf32>
    %277 = arith.mulf %261, %269 : vector<2x16xf32>
    %278 = arith.addf %276, %277 : vector<2x16xf32>
    %279 = math.tanh %278 : vector<2x16xf32>
    %280 = arith.mulf %275, %279 : vector<2x16xf32>
    %281 = arith.index_cast %250 : i32 to index
    %c0_77 = arith.constant 0 : index
    %c0_78 = arith.constant 0 : index
    %282 = vector.load %arg6[%281, %c0_77, %c0_78] : memref<8x2x16xf32, #tpu.memory_space<vmem>>, vector<1x2x16xf32>
    %283 = vector.shape_cast %282 : vector<1x2x16xf32> to vector<2x16xf32>
    %284 = vector.shape_cast %280 : vector<2x16xf32> to vector<1x2x16xf32>
    tpu.vector_store %arg6[%281, %c0_77, %c0_78], %284 {strides = array<i32>} : memref<8x2x16xf32, #tpu.memory_space<vmem>>, vector<1x2x16xf32>,
    %c4_i32 = arith.constant 4 : i32
    %285 = arith.index_cast %c4_i32 : i32 to index
    %c0_79 = arith.constant 0 : index
    %c0_80 = arith.constant 0 : index
    %286 = vector.load %arg1[%285, %c0_79, %c0_80] : memref<8x2x64xf32, #tpu.memory_space<vmem>>, vector<1x2x64xf32>
    %287 = vector.shape_cast %286 : vector<1x2x64xf32> to vector<2x64xf32>
    %cst_81 = arith.constant dense<0.000000e+00> : vector<2x64xf32>
    %288 = tpu.matmul %245, %3, %cst_81 {dimension_numbers = #tpu.dot_dimension_numbers<[1], [0], [0], [1], [0, 0, 1, 1], [], []>} : vector<2x16xf32>, vector<16x64xf32>, vector<2x64xf32> -> vector<2x64xf32>
    %289 = arith.addf %287, %288 : vector<2x64xf32>
    %290 = vector.extract_strided_slice %289 {offsets = [0, 0], sizes = [2, 16], strides = [1, 1]} : vector<2x64xf32> to vector<2x16xf32>
    %291 = arith.negf %290 : vector<2x16xf32>
    %292 = math.exp %291 : vector<2x16xf32>
    %cst_82 = arith.constant 1.000000e+00 : f32
    %293 = vector.broadcast %cst_82 : f32 to vector<2x16xf32>
    %294 = arith.addf %293, %292 : vector<2x16xf32>
    %295 = arith.divf %293, %294 : vector<2x16xf32>
    %296 = vector.extract_strided_slice %289 {offsets = [0, 16], sizes = [2, 16], strides = [1, 1]} : vector<2x64xf32> to vector<2x16xf32>
    %297 = arith.negf %296 : vector<2x16xf32>
    %298 = math.exp %297 : vector<2x16xf32>
    %cst_83 = arith.constant 1.000000e+00 : f32
    %299 = vector.broadcast %cst_83 : f32 to vector<2x16xf32>
    %300 = arith.addf %299, %298 : vector<2x16xf32>
    %301 = arith.divf %299, %300 : vector<2x16xf32>
    %302 = vector.extract_strided_slice %289 {offsets = [0, 32], sizes = [2, 16], strides = [1, 1]} : vector<2x64xf32> to vector<2x16xf32>
    %303 = math.tanh %302 : vector<2x16xf32>
    %304 = vector.extract_strided_slice %289 {offsets = [0, 48], sizes = [2, 16], strides = [1, 1]} : vector<2x64xf32> to vector<2x16xf32>
    %305 = arith.negf %304 : vector<2x16xf32>
    %306 = math.exp %305 : vector<2x16xf32>
    %cst_84 = arith.constant 1.000000e+00 : f32
    %307 = vector.broadcast %cst_84 : f32 to vector<2x16xf32>
    %308 = arith.addf %307, %306 : vector<2x16xf32>
    %309 = arith.divf %307, %308 : vector<2x16xf32>
    %310 = arith.mulf %301, %243 : vector<2x16xf32>
    %311 = arith.mulf %295, %303 : vector<2x16xf32>
    %312 = arith.addf %310, %311 : vector<2x16xf32>
    %313 = math.tanh %312 : vector<2x16xf32>
    %314 = arith.mulf %309, %313 : vector<2x16xf32>
    %315 = arith.index_cast %c4_i32 : i32 to index
    %c0_85 = arith.constant 0 : index
    %c0_86 = arith.constant 0 : index
    %316 = vector.load %arg5[%315, %c0_85, %c0_86] : memref<8x2x16xf32, #tpu.memory_space<vmem>>, vector<1x2x16xf32>
    %317 = vector.shape_cast %316 : vector<1x2x16xf32> to vector<2x16xf32>
    %318 = vector.shape_cast %314 : vector<2x16xf32> to vector<1x2x16xf32>
    tpu.vector_store %arg5[%315, %c0_85, %c0_86], %318 {strides = array<i32>} : memref<8x2x16xf32, #tpu.memory_space<vmem>>, vector<1x2x16xf32>,
    %c7_i32_87 = arith.constant 7 : i32
    %319 = arith.subi %c7_i32_87, %c4_i32 : i32
    %320 = arith.index_cast %319 : i32 to index
    %c0_88 = arith.constant 0 : index
    %c0_89 = arith.constant 0 : index
    %321 = vector.load %arg2[%320, %c0_88, %c0_89] : memref<8x2x64xf32, #tpu.memory_space<vmem>>, vector<1x2x64xf32>
    %322 = vector.shape_cast %321 : vector<1x2x64xf32> to vector<2x64xf32>
    %cst_90 = arith.constant dense<0.000000e+00> : vector<2x64xf32>
    %323 = tpu.matmul %280, %4, %cst_90 {dimension_numbers = #tpu.dot_dimension_numbers<[1], [0], [0], [1], [0, 0, 1, 1], [], []>} : vector<2x16xf32>, vector<16x64xf32>, vector<2x64xf32> -> vector<2x64xf32>
    %324 = arith.addf %322, %323 : vector<2x64xf32>
    %325 = vector.extract_strided_slice %324 {offsets = [0, 0], sizes = [2, 16], strides = [1, 1]} : vector<2x64xf32> to vector<2x16xf32>
    %326 = arith.negf %325 : vector<2x16xf32>
    %327 = math.exp %326 : vector<2x16xf32>
    %cst_91 = arith.constant 1.000000e+00 : f32
    %328 = vector.broadcast %cst_91 : f32 to vector<2x16xf32>
    %329 = arith.addf %328, %327 : vector<2x16xf32>
    %330 = arith.divf %328, %329 : vector<2x16xf32>
    %331 = vector.extract_strided_slice %324 {offsets = [0, 16], sizes = [2, 16], strides = [1, 1]} : vector<2x64xf32> to vector<2x16xf32>
    %332 = arith.negf %331 : vector<2x16xf32>
    %333 = math.exp %332 : vector<2x16xf32>
    %cst_92 = arith.constant 1.000000e+00 : f32
    %334 = vector.broadcast %cst_92 : f32 to vector<2x16xf32>
    %335 = arith.addf %334, %333 : vector<2x16xf32>
    %336 = arith.divf %334, %335 : vector<2x16xf32>
    %337 = vector.extract_strided_slice %324 {offsets = [0, 32], sizes = [2, 16], strides = [1, 1]} : vector<2x64xf32> to vector<2x16xf32>
    %338 = math.tanh %337 : vector<2x16xf32>
    %339 = vector.extract_strided_slice %324 {offsets = [0, 48], sizes = [2, 16], strides = [1, 1]} : vector<2x64xf32> to vector<2x16xf32>
    %340 = arith.negf %339 : vector<2x16xf32>
    %341 = math.exp %340 : vector<2x16xf32>
    %cst_93 = arith.constant 1.000000e+00 : f32
    %342 = vector.broadcast %cst_93 : f32 to vector<2x16xf32>
    %343 = arith.addf %342, %341 : vector<2x16xf32>
    %344 = arith.divf %342, %343 : vector<2x16xf32>
    %345 = arith.mulf %336, %278 : vector<2x16xf32>
    %346 = arith.mulf %330, %338 : vector<2x16xf32>
    %347 = arith.addf %345, %346 : vector<2x16xf32>
    %348 = math.tanh %347 : vector<2x16xf32>
    %349 = arith.mulf %344, %348 : vector<2x16xf32>
    %350 = arith.index_cast %319 : i32 to index
    %c0_94 = arith.constant 0 : index
    %c0_95 = arith.constant 0 : index
    %351 = vector.load %arg6[%350, %c0_94, %c0_95] : memref<8x2x16xf32, #tpu.memory_space<vmem>>, vector<1x2x16xf32>
    %352 = vector.shape_cast %351 : vector<1x2x16xf32> to vector<2x16xf32>
    %353 = vector.shape_cast %349 : vector<2x16xf32> to vector<1x2x16xf32>
    tpu.vector_store %arg6[%350, %c0_94, %c0_95], %353 {strides = array<i32>} : memref<8x2x16xf32, #tpu.memory_space<vmem>>, vector<1x2x16xf32>,
    %c5_i32 = arith.constant 5 : i32
    %354 = arith.index_cast %c5_i32 : i32 to index
    %c0_96 = arith.constant 0 : index
    %c0_97 = arith.constant 0 : index
    %355 = vector.load %arg1[%354, %c0_96, %c0_97] : memref<8x2x64xf32, #tpu.memory_space<vmem>>, vector<1x2x64xf32>
    %356 = vector.shape_cast %355 : vector<1x2x64xf32> to vector<2x64xf32>
    %cst_98 = arith.constant dense<0.000000e+00> : vector<2x64xf32>
    %357 = tpu.matmul %314, %3, %cst_98 {dimension_numbers = #tpu.dot_dimension_numbers<[1], [0], [0], [1], [0, 0, 1, 1], [], []>} : vector<2x16xf32>, vector<16x64xf32>, vector<2x64xf32> -> vector<2x64xf32>
    %358 = arith.addf %356, %357 : vector<2x64xf32>
    %359 = vector.extract_strided_slice %358 {offsets = [0, 0], sizes = [2, 16], strides = [1, 1]} : vector<2x64xf32> to vector<2x16xf32>
    %360 = arith.negf %359 : vector<2x16xf32>
    %361 = math.exp %360 : vector<2x16xf32>
    %cst_99 = arith.constant 1.000000e+00 : f32
    %362 = vector.broadcast %cst_99 : f32 to vector<2x16xf32>
    %363 = arith.addf %362, %361 : vector<2x16xf32>
    %364 = arith.divf %362, %363 : vector<2x16xf32>
    %365 = vector.extract_strided_slice %358 {offsets = [0, 16], sizes = [2, 16], strides = [1, 1]} : vector<2x64xf32> to vector<2x16xf32>
    %366 = arith.negf %365 : vector<2x16xf32>
    %367 = math.exp %366 : vector<2x16xf32>
    %cst_100 = arith.constant 1.000000e+00 : f32
    %368 = vector.broadcast %cst_100 : f32 to vector<2x16xf32>
    %369 = arith.addf %368, %367 : vector<2x16xf32>
    %370 = arith.divf %368, %369 : vector<2x16xf32>
    %371 = vector.extract_strided_slice %358 {offsets = [0, 32], sizes = [2, 16], strides = [1, 1]} : vector<2x64xf32> to vector<2x16xf32>
    %372 = math.tanh %371 : vector<2x16xf32>
    %373 = vector.extract_strided_slice %358 {offsets = [0, 48], sizes = [2, 16], strides = [1, 1]} : vector<2x64xf32> to vector<2x16xf32>
    %374 = arith.negf %373 : vector<2x16xf32>
    %375 = math.exp %374 : vector<2x16xf32>
    %cst_101 = arith.constant 1.000000e+00 : f32
    %376 = vector.broadcast %cst_101 : f32 to vector<2x16xf32>
    %377 = arith.addf %376, %375 : vector<2x16xf32>
    %378 = arith.divf %376, %377 : vector<2x16xf32>
    %379 = arith.mulf %370, %312 : vector<2x16xf32>
    %380 = arith.mulf %364, %372 : vector<2x16xf32>
    %381 = arith.addf %379, %380 : vector<2x16xf32>
    %382 = math.tanh %381 : vector<2x16xf32>
    %383 = arith.mulf %378, %382 : vector<2x16xf32>
    %384 = arith.index_cast %c5_i32 : i32 to index
    %c0_102 = arith.constant 0 : index
    %c0_103 = arith.constant 0 : index
    %385 = vector.load %arg5[%384, %c0_102, %c0_103] : memref<8x2x16xf32, #tpu.memory_space<vmem>>, vector<1x2x16xf32>
    %386 = vector.shape_cast %385 : vector<1x2x16xf32> to vector<2x16xf32>
    %387 = vector.shape_cast %383 : vector<2x16xf32> to vector<1x2x16xf32>
    tpu.vector_store %arg5[%384, %c0_102, %c0_103], %387 {strides = array<i32>} : memref<8x2x16xf32, #tpu.memory_space<vmem>>, vector<1x2x16xf32>,
    %c7_i32_104 = arith.constant 7 : i32
    %388 = arith.subi %c7_i32_104, %c5_i32 : i32
    %389 = arith.index_cast %388 : i32 to index
    %c0_105 = arith.constant 0 : index
    %c0_106 = arith.constant 0 : index
    %390 = vector.load %arg2[%389, %c0_105, %c0_106] : memref<8x2x64xf32, #tpu.memory_space<vmem>>, vector<1x2x64xf32>
    %391 = vector.shape_cast %390 : vector<1x2x64xf32> to vector<2x64xf32>
    %cst_107 = arith.constant dense<0.000000e+00> : vector<2x64xf32>
    %392 = tpu.matmul %349, %4, %cst_107 {dimension_numbers = #tpu.dot_dimension_numbers<[1], [0], [0], [1], [0, 0, 1, 1], [], []>} : vector<2x16xf32>, vector<16x64xf32>, vector<2x64xf32> -> vector<2x64xf32>
    %393 = arith.addf %391, %392 : vector<2x64xf32>
    %394 = vector.extract_strided_slice %393 {offsets = [0, 0], sizes = [2, 16], strides = [1, 1]} : vector<2x64xf32> to vector<2x16xf32>
    %395 = arith.negf %394 : vector<2x16xf32>
    %396 = math.exp %395 : vector<2x16xf32>
    %cst_108 = arith.constant 1.000000e+00 : f32
    %397 = vector.broadcast %cst_108 : f32 to vector<2x16xf32>
    %398 = arith.addf %397, %396 : vector<2x16xf32>
    %399 = arith.divf %397, %398 : vector<2x16xf32>
    %400 = vector.extract_strided_slice %393 {offsets = [0, 16], sizes = [2, 16], strides = [1, 1]} : vector<2x64xf32> to vector<2x16xf32>
    %401 = arith.negf %400 : vector<2x16xf32>
    %402 = math.exp %401 : vector<2x16xf32>
    %cst_109 = arith.constant 1.000000e+00 : f32
    %403 = vector.broadcast %cst_109 : f32 to vector<2x16xf32>
    %404 = arith.addf %403, %402 : vector<2x16xf32>
    %405 = arith.divf %403, %404 : vector<2x16xf32>
    %406 = vector.extract_strided_slice %393 {offsets = [0, 32], sizes = [2, 16], strides = [1, 1]} : vector<2x64xf32> to vector<2x16xf32>
    %407 = math.tanh %406 : vector<2x16xf32>
    %408 = vector.extract_strided_slice %393 {offsets = [0, 48], sizes = [2, 16], strides = [1, 1]} : vector<2x64xf32> to vector<2x16xf32>
    %409 = arith.negf %408 : vector<2x16xf32>
    %410 = math.exp %409 : vector<2x16xf32>
    %cst_110 = arith.constant 1.000000e+00 : f32
    %411 = vector.broadcast %cst_110 : f32 to vector<2x16xf32>
    %412 = arith.addf %411, %410 : vector<2x16xf32>
    %413 = arith.divf %411, %412 : vector<2x16xf32>
    %414 = arith.mulf %405, %347 : vector<2x16xf32>
    %415 = arith.mulf %399, %407 : vector<2x16xf32>
    %416 = arith.addf %414, %415 : vector<2x16xf32>
    %417 = math.tanh %416 : vector<2x16xf32>
    %418 = arith.mulf %413, %417 : vector<2x16xf32>
    %419 = arith.index_cast %388 : i32 to index
    %c0_111 = arith.constant 0 : index
    %c0_112 = arith.constant 0 : index
    %420 = vector.load %arg6[%419, %c0_111, %c0_112] : memref<8x2x16xf32, #tpu.memory_space<vmem>>, vector<1x2x16xf32>
    %421 = vector.shape_cast %420 : vector<1x2x16xf32> to vector<2x16xf32>
    %422 = vector.shape_cast %418 : vector<2x16xf32> to vector<1x2x16xf32>
    tpu.vector_store %arg6[%419, %c0_111, %c0_112], %422 {strides = array<i32>} : memref<8x2x16xf32, #tpu.memory_space<vmem>>, vector<1x2x16xf32>,
    %c6_i32 = arith.constant 6 : i32
    %423 = arith.index_cast %c6_i32 : i32 to index
    %c0_113 = arith.constant 0 : index
    %c0_114 = arith.constant 0 : index
    %424 = vector.load %arg1[%423, %c0_113, %c0_114] : memref<8x2x64xf32, #tpu.memory_space<vmem>>, vector<1x2x64xf32>
    %425 = vector.shape_cast %424 : vector<1x2x64xf32> to vector<2x64xf32>
    %cst_115 = arith.constant dense<0.000000e+00> : vector<2x64xf32>
    %426 = tpu.matmul %383, %3, %cst_115 {dimension_numbers = #tpu.dot_dimension_numbers<[1], [0], [0], [1], [0, 0, 1, 1], [], []>} : vector<2x16xf32>, vector<16x64xf32>, vector<2x64xf32> -> vector<2x64xf32>
    %427 = arith.addf %425, %426 : vector<2x64xf32>
    %428 = vector.extract_strided_slice %427 {offsets = [0, 0], sizes = [2, 16], strides = [1, 1]} : vector<2x64xf32> to vector<2x16xf32>
    %429 = arith.negf %428 : vector<2x16xf32>
    %430 = math.exp %429 : vector<2x16xf32>
    %cst_116 = arith.constant 1.000000e+00 : f32
    %431 = vector.broadcast %cst_116 : f32 to vector<2x16xf32>
    %432 = arith.addf %431, %430 : vector<2x16xf32>
    %433 = arith.divf %431, %432 : vector<2x16xf32>
    %434 = vector.extract_strided_slice %427 {offsets = [0, 16], sizes = [2, 16], strides = [1, 1]} : vector<2x64xf32> to vector<2x16xf32>
    %435 = arith.negf %434 : vector<2x16xf32>
    %436 = math.exp %435 : vector<2x16xf32>
    %cst_117 = arith.constant 1.000000e+00 : f32
    %437 = vector.broadcast %cst_117 : f32 to vector<2x16xf32>
    %438 = arith.addf %437, %436 : vector<2x16xf32>
    %439 = arith.divf %437, %438 : vector<2x16xf32>
    %440 = vector.extract_strided_slice %427 {offsets = [0, 32], sizes = [2, 16], strides = [1, 1]} : vector<2x64xf32> to vector<2x16xf32>
    %441 = math.tanh %440 : vector<2x16xf32>
    %442 = vector.extract_strided_slice %427 {offsets = [0, 48], sizes = [2, 16], strides = [1, 1]} : vector<2x64xf32> to vector<2x16xf32>
    %443 = arith.negf %442 : vector<2x16xf32>
    %444 = math.exp %443 : vector<2x16xf32>
    %cst_118 = arith.constant 1.000000e+00 : f32
    %445 = vector.broadcast %cst_118 : f32 to vector<2x16xf32>
    %446 = arith.addf %445, %444 : vector<2x16xf32>
    %447 = arith.divf %445, %446 : vector<2x16xf32>
    %448 = arith.mulf %439, %381 : vector<2x16xf32>
    %449 = arith.mulf %433, %441 : vector<2x16xf32>
    %450 = arith.addf %448, %449 : vector<2x16xf32>
    %451 = math.tanh %450 : vector<2x16xf32>
    %452 = arith.mulf %447, %451 : vector<2x16xf32>
    %453 = arith.index_cast %c6_i32 : i32 to index
    %c0_119 = arith.constant 0 : index
    %c0_120 = arith.constant 0 : index
    %454 = vector.load %arg5[%453, %c0_119, %c0_120] : memref<8x2x16xf32, #tpu.memory_space<vmem>>, vector<1x2x16xf32>
    %455 = vector.shape_cast %454 : vector<1x2x16xf32> to vector<2x16xf32>
    %456 = vector.shape_cast %452 : vector<2x16xf32> to vector<1x2x16xf32>
    tpu.vector_store %arg5[%453, %c0_119, %c0_120], %456 {strides = array<i32>} : memref<8x2x16xf32, #tpu.memory_space<vmem>>, vector<1x2x16xf32>,
    %c7_i32_121 = arith.constant 7 : i32
    %457 = arith.subi %c7_i32_121, %c6_i32 : i32
    %458 = arith.index_cast %457 : i32 to index
    %c0_122 = arith.constant 0 : index
    %c0_123 = arith.constant 0 : index
    %459 = vector.load %arg2[%458, %c0_122, %c0_123] : memref<8x2x64xf32, #tpu.memory_space<vmem>>, vector<1x2x64xf32>
    %460 = vector.shape_cast %459 : vector<1x2x64xf32> to vector<2x64xf32>
    %cst_124 = arith.constant dense<0.000000e+00> : vector<2x64xf32>
    %461 = tpu.matmul %418, %4, %cst_124 {dimension_numbers = #tpu.dot_dimension_numbers<[1], [0], [0], [1], [0, 0, 1, 1], [], []>} : vector<2x16xf32>, vector<16x64xf32>, vector<2x64xf32> -> vector<2x64xf32>
    %462 = arith.addf %460, %461 : vector<2x64xf32>
    %463 = vector.extract_strided_slice %462 {offsets = [0, 0], sizes = [2, 16], strides = [1, 1]} : vector<2x64xf32> to vector<2x16xf32>
    %464 = arith.negf %463 : vector<2x16xf32>
    %465 = math.exp %464 : vector<2x16xf32>
    %cst_125 = arith.constant 1.000000e+00 : f32
    %466 = vector.broadcast %cst_125 : f32 to vector<2x16xf32>
    %467 = arith.addf %466, %465 : vector<2x16xf32>
    %468 = arith.divf %466, %467 : vector<2x16xf32>
    %469 = vector.extract_strided_slice %462 {offsets = [0, 16], sizes = [2, 16], strides = [1, 1]} : vector<2x64xf32> to vector<2x16xf32>
    %470 = arith.negf %469 : vector<2x16xf32>
    %471 = math.exp %470 : vector<2x16xf32>
    %cst_126 = arith.constant 1.000000e+00 : f32
    %472 = vector.broadcast %cst_126 : f32 to vector<2x16xf32>
    %473 = arith.addf %472, %471 : vector<2x16xf32>
    %474 = arith.divf %472, %473 : vector<2x16xf32>
    %475 = vector.extract_strided_slice %462 {offsets = [0, 32], sizes = [2, 16], strides = [1, 1]} : vector<2x64xf32> to vector<2x16xf32>
    %476 = math.tanh %475 : vector<2x16xf32>
    %477 = vector.extract_strided_slice %462 {offsets = [0, 48], sizes = [2, 16], strides = [1, 1]} : vector<2x64xf32> to vector<2x16xf32>
    %478 = arith.negf %477 : vector<2x16xf32>
    %479 = math.exp %478 : vector<2x16xf32>
    %cst_127 = arith.constant 1.000000e+00 : f32
    %480 = vector.broadcast %cst_127 : f32 to vector<2x16xf32>
    %481 = arith.addf %480, %479 : vector<2x16xf32>
    %482 = arith.divf %480, %481 : vector<2x16xf32>
    %483 = arith.mulf %474, %416 : vector<2x16xf32>
    %484 = arith.mulf %468, %476 : vector<2x16xf32>
    %485 = arith.addf %483, %484 : vector<2x16xf32>
    %486 = math.tanh %485 : vector<2x16xf32>
    %487 = arith.mulf %482, %486 : vector<2x16xf32>
    %488 = arith.index_cast %457 : i32 to index
    %c0_128 = arith.constant 0 : index
    %c0_129 = arith.constant 0 : index
    %489 = vector.load %arg6[%488, %c0_128, %c0_129] : memref<8x2x16xf32, #tpu.memory_space<vmem>>, vector<1x2x16xf32>
    %490 = vector.shape_cast %489 : vector<1x2x16xf32> to vector<2x16xf32>
    %491 = vector.shape_cast %487 : vector<2x16xf32> to vector<1x2x16xf32>
    tpu.vector_store %arg6[%488, %c0_128, %c0_129], %491 {strides = array<i32>} : memref<8x2x16xf32, #tpu.memory_space<vmem>>, vector<1x2x16xf32>,
    %c7_i32_130 = arith.constant 7 : i32
    %492 = arith.index_cast %c7_i32_130 : i32 to index
    %c0_131 = arith.constant 0 : index
    %c0_132 = arith.constant 0 : index
    %493 = vector.load %arg1[%492, %c0_131, %c0_132] : memref<8x2x64xf32, #tpu.memory_space<vmem>>, vector<1x2x64xf32>
    %494 = vector.shape_cast %493 : vector<1x2x64xf32> to vector<2x64xf32>
    %cst_133 = arith.constant dense<0.000000e+00> : vector<2x64xf32>
    %495 = tpu.matmul %452, %3, %cst_133 {dimension_numbers = #tpu.dot_dimension_numbers<[1], [0], [0], [1], [0, 0, 1, 1], [], []>} : vector<2x16xf32>, vector<16x64xf32>, vector<2x64xf32> -> vector<2x64xf32>
    %496 = arith.addf %494, %495 : vector<2x64xf32>
    %497 = vector.extract_strided_slice %496 {offsets = [0, 0], sizes = [2, 16], strides = [1, 1]} : vector<2x64xf32> to vector<2x16xf32>
    %498 = arith.negf %497 : vector<2x16xf32>
    %499 = math.exp %498 : vector<2x16xf32>
    %cst_134 = arith.constant 1.000000e+00 : f32
    %500 = vector.broadcast %cst_134 : f32 to vector<2x16xf32>
    %501 = arith.addf %500, %499 : vector<2x16xf32>
    %502 = arith.divf %500, %501 : vector<2x16xf32>
    %503 = vector.extract_strided_slice %496 {offsets = [0, 16], sizes = [2, 16], strides = [1, 1]} : vector<2x64xf32> to vector<2x16xf32>
    %504 = arith.negf %503 : vector<2x16xf32>
    %505 = math.exp %504 : vector<2x16xf32>
    %cst_135 = arith.constant 1.000000e+00 : f32
    %506 = vector.broadcast %cst_135 : f32 to vector<2x16xf32>
    %507 = arith.addf %506, %505 : vector<2x16xf32>
    %508 = arith.divf %506, %507 : vector<2x16xf32>
    %509 = vector.extract_strided_slice %496 {offsets = [0, 32], sizes = [2, 16], strides = [1, 1]} : vector<2x64xf32> to vector<2x16xf32>
    %510 = math.tanh %509 : vector<2x16xf32>
    %511 = vector.extract_strided_slice %496 {offsets = [0, 48], sizes = [2, 16], strides = [1, 1]} : vector<2x64xf32> to vector<2x16xf32>
    %512 = arith.negf %511 : vector<2x16xf32>
    %513 = math.exp %512 : vector<2x16xf32>
    %cst_136 = arith.constant 1.000000e+00 : f32
    %514 = vector.broadcast %cst_136 : f32 to vector<2x16xf32>
    %515 = arith.addf %514, %513 : vector<2x16xf32>
    %516 = arith.divf %514, %515 : vector<2x16xf32>
    %517 = arith.mulf %508, %450 : vector<2x16xf32>
    %518 = arith.mulf %502, %510 : vector<2x16xf32>
    %519 = arith.addf %517, %518 : vector<2x16xf32>
    %520 = math.tanh %519 : vector<2x16xf32>
    %521 = arith.mulf %516, %520 : vector<2x16xf32>
    %522 = arith.index_cast %c7_i32_130 : i32 to index
    %c0_137 = arith.constant 0 : index
    %c0_138 = arith.constant 0 : index
    %523 = vector.load %arg5[%522, %c0_137, %c0_138] : memref<8x2x16xf32, #tpu.memory_space<vmem>>, vector<1x2x16xf32>
    %524 = vector.shape_cast %523 : vector<1x2x16xf32> to vector<2x16xf32>
    %525 = vector.shape_cast %521 : vector<2x16xf32> to vector<1x2x16xf32>
    tpu.vector_store %arg5[%522, %c0_137, %c0_138], %525 {strides = array<i32>} : memref<8x2x16xf32, #tpu.memory_space<vmem>>, vector<1x2x16xf32>,
    %c7_i32_139 = arith.constant 7 : i32
    %526 = arith.subi %c7_i32_139, %c7_i32_130 : i32
    %527 = arith.index_cast %526 : i32 to index
    %c0_140 = arith.constant 0 : index
    %c0_141 = arith.constant 0 : index
    %528 = vector.load %arg2[%527, %c0_140, %c0_141] : memref<8x2x64xf32, #tpu.memory_space<vmem>>, vector<1x2x64xf32>
    %529 = vector.shape_cast %528 : vector<1x2x64xf32> to vector<2x64xf32>
    %cst_142 = arith.constant dense<0.000000e+00> : vector<2x64xf32>
    %530 = tpu.matmul %487, %4, %cst_142 {dimension_numbers = #tpu.dot_dimension_numbers<[1], [0], [0], [1], [0, 0, 1, 1], [], []>} : vector<2x16xf32>, vector<16x64xf32>, vector<2x64xf32> -> vector<2x64xf32>
    %531 = arith.addf %529, %530 : vector<2x64xf32>
    %532 = vector.extract_strided_slice %531 {offsets = [0, 0], sizes = [2, 16], strides = [1, 1]} : vector<2x64xf32> to vector<2x16xf32>
    %533 = arith.negf %532 : vector<2x16xf32>
    %534 = math.exp %533 : vector<2x16xf32>
    %cst_143 = arith.constant 1.000000e+00 : f32
    %535 = vector.broadcast %cst_143 : f32 to vector<2x16xf32>
    %536 = arith.addf %535, %534 : vector<2x16xf32>
    %537 = arith.divf %535, %536 : vector<2x16xf32>
    %538 = vector.extract_strided_slice %531 {offsets = [0, 16], sizes = [2, 16], strides = [1, 1]} : vector<2x64xf32> to vector<2x16xf32>
    %539 = arith.negf %538 : vector<2x16xf32>
    %540 = math.exp %539 : vector<2x16xf32>
    %cst_144 = arith.constant 1.000000e+00 : f32
    %541 = vector.broadcast %cst_144 : f32 to vector<2x16xf32>
    %542 = arith.addf %541, %540 : vector<2x16xf32>
    %543 = arith.divf %541, %542 : vector<2x16xf32>
    %544 = vector.extract_strided_slice %531 {offsets = [0, 32], sizes = [2, 16], strides = [1, 1]} : vector<2x64xf32> to vector<2x16xf32>
    %545 = math.tanh %544 : vector<2x16xf32>
    %546 = vector.extract_strided_slice %531 {offsets = [0, 48], sizes = [2, 16], strides = [1, 1]} : vector<2x64xf32> to vector<2x16xf32>
    %547 = arith.negf %546 : vector<2x16xf32>
    %548 = math.exp %547 : vector<2x16xf32>
    %cst_145 = arith.constant 1.000000e+00 : f32
    %549 = vector.broadcast %cst_145 : f32 to vector<2x16xf32>
    %550 = arith.addf %549, %548 : vector<2x16xf32>
    %551 = arith.divf %549, %550 : vector<2x16xf32>
    %552 = arith.mulf %543, %485 : vector<2x16xf32>
    %553 = arith.mulf %537, %545 : vector<2x16xf32>
    %554 = arith.addf %552, %553 : vector<2x16xf32>
    %555 = math.tanh %554 : vector<2x16xf32>
    %556 = arith.mulf %551, %555 : vector<2x16xf32>
    %557 = arith.index_cast %526 : i32 to index
    %c0_146 = arith.constant 0 : index
    %c0_147 = arith.constant 0 : index
    %558 = vector.load %arg6[%557, %c0_146, %c0_147] : memref<8x2x16xf32, #tpu.memory_space<vmem>>, vector<1x2x16xf32>
    %559 = vector.shape_cast %558 : vector<1x2x16xf32> to vector<2x16xf32>
    %560 = vector.shape_cast %556 : vector<2x16xf32> to vector<1x2x16xf32>
    tpu.vector_store %arg6[%557, %c0_146, %c0_147], %560 {strides = array<i32>} : memref<8x2x16xf32, #tpu.memory_space<vmem>>, vector<1x2x16xf32>,
    %c8_i32 = arith.constant 8 : i32
    %c0_148 = arith.constant 0 : index
    %c0_149 = arith.constant 0 : index
    %561 = vector.load %arg9[%c0_148, %c0_149] : memref<2x16xf32, #tpu.memory_space<vmem>>, vector<2x16xf32>
    tpu.vector_store %arg9[%c0_148, %c0_149], %521 {strides = array<i32>} : memref<2x16xf32, #tpu.memory_space<vmem>>, vector<2x16xf32>,
    %c0_150 = arith.constant 0 : index
    %c0_151 = arith.constant 0 : index
    %562 = vector.load %arg10[%c0_150, %c0_151] : memref<2x16xf32, #tpu.memory_space<vmem>>, vector<2x16xf32>
    tpu.vector_store %arg10[%c0_150, %c0_151], %519 {strides = array<i32>} : memref<2x16xf32, #tpu.memory_space<vmem>>, vector<2x16xf32>,
    %c0_152 = arith.constant 0 : index
    %c0_153 = arith.constant 0 : index
    %563 = vector.load %arg11[%c0_152, %c0_153] : memref<2x16xf32, #tpu.memory_space<vmem>>, vector<2x16xf32>
    tpu.vector_store %arg11[%c0_152, %c0_153], %556 {strides = array<i32>} : memref<2x16xf32, #tpu.memory_space<vmem>>, vector<2x16xf32>,
    %c0_154 = arith.constant 0 : index
    %c0_155 = arith.constant 0 : index
    %564 = vector.load %arg12[%c0_154, %c0_155] : memref<2x16xf32, #tpu.memory_space<vmem>>, vector<2x16xf32>
    tpu.vector_store %arg12[%c0_154, %c0_155], %554 {strides = array<i32>} : memref<2x16xf32, #tpu.memory_space<vmem>>, vector<2x16xf32>,
    %c0_156 = arith.constant 0 : index
    %c0_157 = arith.constant 0 : index
    %c0_158 = arith.constant 0 : index
    %565 = vector.load %arg7[%c0_156, %c0_157, %c0_158] : memref<2x2x16xf32, #tpu.memory_space<vmem>>, vector<1x2x16xf32>
    %566 = vector.shape_cast %565 : vector<1x2x16xf32> to vector<2x16xf32>
    %567 = vector.shape_cast %521 : vector<2x16xf32> to vector<1x2x16xf32>
    tpu.vector_store %arg7[%c0_156, %c0_157, %c0_158], %567 {strides = array<i32>} : memref<2x2x16xf32, #tpu.memory_space<vmem>>, vector<1x2x16xf32>,
    %c1 = arith.constant 1 : index
    %c0_159 = arith.constant 0 : index
    %c0_160 = arith.constant 0 : index
    %568 = vector.load %arg7[%c1, %c0_159, %c0_160] : memref<2x2x16xf32, #tpu.memory_space<vmem>>, vector<1x2x16xf32>
    %569 = vector.shape_cast %568 : vector<1x2x16xf32> to vector<2x16xf32>
    %570 = vector.shape_cast %556 : vector<2x16xf32> to vector<1x2x16xf32>
    tpu.vector_store %arg7[%c1, %c0_159, %c0_160], %570 {strides = array<i32>} : memref<2x2x16xf32, #tpu.memory_space<vmem>>, vector<1x2x16xf32>,
    %c0_161 = arith.constant 0 : index
    %c0_162 = arith.constant 0 : index
    %c0_163 = arith.constant 0 : index
    %571 = vector.load %arg8[%c0_161, %c0_162, %c0_163] : memref<2x2x16xf32, #tpu.memory_space<vmem>>, vector<1x2x16xf32>
    %572 = vector.shape_cast %571 : vector<1x2x16xf32> to vector<2x16xf32>
    %573 = vector.shape_cast %519 : vector<2x16xf32> to vector<1x2x16xf32>
    tpu.vector_store %arg8[%c0_161, %c0_162, %c0_163], %573 {strides = array<i32>} : memref<2x2x16xf32, #tpu.memory_space<vmem>>, vector<1x2x16xf32>,
    %c1_164 = arith.constant 1 : index
    %c0_165 = arith.constant 0 : index
    %c0_166 = arith.constant 0 : index
    %574 = vector.load %arg8[%c1_164, %c0_165, %c0_166] : memref<2x2x16xf32, #tpu.memory_space<vmem>>, vector<1x2x16xf32>
    %575 = vector.shape_cast %574 : vector<1x2x16xf32> to vector<2x16xf32>
    %576 = vector.shape_cast %554 : vector<2x16xf32> to vector<1x2x16xf32>
    tpu.vector_store %arg8[%c1_164, %c0_165, %c0_166], %576 {strides = array<i32>} : memref<2x2x16xf32, #tpu.memory_space<vmem>>, vector<1x2x16xf32>,
    return
  }
  func.func @transform_0(%arg0: i32) -> (i32, i32, i32) {
    %c0_i32 = arith.constant 0 : i32
    %c0_i32_0 = arith.constant 0 : i32
    %c0_i32_1 = arith.constant 0 : i32
    return %arg0, %c0_i32, %c0_i32_0 : i32, i32, i32
  }
  func.func @transform_1(%arg0: i32) -> (i32, i32, i32) {
    %c0_i32 = arith.constant 0 : i32
    %0 = arith.subi %c0_i32, %arg0 : i32
    %c0_i32_0 = arith.constant 0 : i32
    %c0_i32_1 = arith.constant 0 : i32
    %c0_i32_2 = arith.constant 0 : i32
    return %0, %c0_i32_0, %c0_i32_1 : i32, i32, i32
  }
  func.func @transform_2(%arg0: i32) -> (i32, i32) {
    %c0_i32 = arith.constant 0 : i32
    %c0_i32_0 = arith.constant 0 : i32
    %c0_i32_1 = arith.constant 0 : i32
    return %c0_i32, %c0_i32_0 : i32, i32
  }
  func.func @transform_3(%arg0: i32) -> (i32, i32) {
    %c0_i32 = arith.constant 0 : i32
    %c0_i32_0 = arith.constant 0 : i32
    %c0_i32_1 = arith.constant 0 : i32
    return %c0_i32, %c0_i32_0 : i32, i32
  }
  func.func @transform_4(%arg0: i32) -> (i32, i32, i32) {
    %c0_i32 = arith.constant 0 : i32
    %c0_i32_0 = arith.constant 0 : i32
    %c0_i32_1 = arith.constant 0 : i32
    return %arg0, %c0_i32, %c0_i32_0 : i32, i32, i32
  }
  func.func @transform_5(%arg0: i32) -> (i32, i32, i32) {
    %c0_i32 = arith.constant 0 : i32
    %0 = arith.subi %c0_i32, %arg0 : i32
    %c0_i32_0 = arith.constant 0 : i32
    %c0_i32_1 = arith.constant 0 : i32
    %c0_i32_2 = arith.constant 0 : i32
    return %0, %c0_i32_0, %c0_i32_1 : i32, i32, i32
  }
  func.func @transform_6(%arg0: i32) -> (i32, i32, i32) {
    %c0_i32 = arith.constant 0 : i32
    %c0_i32_0 = arith.constant 0 : i32
    %c0_i32_1 = arith.constant 0 : i32
    %c0_i32_2 = arith.constant 0 : i32
    return %c0_i32, %c0_i32_0, %c0_i32_1 : i32, i32, i32
  }
  func.func @transform_7(%arg0: i32) -> (i32, i32, i32) {
    %c0_i32 = arith.constant 0 : i32
    %c0_i32_0 = arith.constant 0 : i32
    %c0_i32_1 = arith.constant 0 : i32
    %c0_i32_2 = arith.constant 0 : i32
    return %c0_i32, %c0_i32_0, %c0_i32_1 : i32, i32, i32
  }
}

</mosaic_0001>

<bundles_post_ra>
// kernel: tpu_custom_call.1
= control target key start
LH: loop header
LB: loop body
LE: loop exit
PB: predicated region body
PF: predicated region fallthrough
CT: control target
= control target key end

     0   :  { %13 = vsyncpa [#allocation7], 0  ;;  %s2835_s0 = inlined_call_operand.hbm [shape: f32[8,2,64], index: 0, kind: input, shape index: {}]   ;;  %s2836_s1 = inlined_call_operand.hbm [shape: f32[8,2,64], index: 1, kind: input, shape index: {}]   ;;  %s2837_s2 = inlined_call_operand.hbm [shape: f32[16,64], index: 2, kind: input, shape index: {}]   ;;  %s2838_s3 = inlined_call_operand.hbm [shape: f32[16,64], index: 3, kind: input, shape index: {}]   ;;  %s2839_s4 = inlined_call_operand.hbm [shape: f32[8,2,16], index: 4, kind: output, shape index: {0}]   ;;  %s2840_s5 = inlined_call_operand.hbm [shape: f32[8,2,16], index: 5, kind: output, shape index: {1}]   ;;  %s2841_s6 = inlined_call_operand.hbm [shape: f32[2,2,16], index: 6, kind: output, shape index: {2}]   ;;  %s2842_s7 = inlined_call_operand.hbm [shape: f32[2,2,16], index: 7, kind: output, shape index: {3}]  }
   0x1   :  { %14 = vsyncpa [#allocation10], 0 }
   0x2   :  { %15 = vsyncpa [#allocation13], 0 }
   0x3   :  { %16 = vsyncpa [#allocation8], 0 }
   0x4   :  { %17 = vsyncpa [#allocation16], 0 }
   0x5   :  { %18 = vsyncpa [#allocation19], 0  ;;  %s2459_s24 = smov [#allocation9]   ;;  %s2460_s26 = smov [#allocation6]  }
   0x6   :  { %s40_s25 = sshll.u32 %s2459_s24, 4  ;;  %s24_s27 = sshll.u32 %s2460_s26, 4  ;;  %s41_s25 = int_to_ptr.vmem [resolvable:$true] %s40_s25  ;;  %s2518_s27 = int_to_ptr.vmem [resolvable:$true] %s24_s27 }
   0x7   :  { %s2271_s30 = scalar_lea.hbm %s2836_s1, 256 }
   0x8   :  { %p2272_p0 = scmp.ne.s32.totalorder %s2836_s1, %s2271_s30  ;;  %p2275_p1 = scmp.lt.u32.totalorder %s2271_s30, %s2836_s1 }
   0xa   :  { %p2277_p2 = pnand %p2275_p1, %p2272_p0 }
   0xc   :  { %2280 = shalt.err (!%p2277_p2)
}
   0xd   :  { %s2281_s12 = scalar_lea.vmem %s41_s25, 256  ;;  %p2286_p4 = scmp.lt.s32.totalorder %s41_s25, %s41_s25 }
   0xe   :  { %p2282_p3 = scmp.ne.s32.totalorder %s41_s25, %s2281_s12  ;;  %p2287_p5 = scmp.lt.s32.totalorder %s2281_s12, %s2281_s12 }
  0x10   :  { %p2288_p6 = por %p2287_p5, %p2286_p4 }
  0x12   :  { %p2289_p7 = pnand %p2288_p6, %p2282_p3 }
  0x14   :  { %2292 = shalt.err (!%p2289_p7)
}
  0x15   :  { %s2461_s13 = smov 32   ;;  %s2462_s14 = smov 2  }
  0x16   :  { %46 = dma.hbm_to_vmem [thread:$0]  %s2836_s1, 256, %s41_s25, [#allocation10], %s2461_s13, %s2461_s13, %s2462_s14  }
  0x17   :  { %s2293_s19 = scalar_lea.hbm %s2835_s0, 256 }
  0x18   :  { %p2294_p8 = scmp.ne.s32.totalorder %s2835_s0, %s2293_s19  ;;  %p2297_p9 = scmp.lt.u32.totalorder %s2293_s19, %s2835_s0 }
  0x1a   :  { %p2299_p10 = pnand %p2297_p9, %p2294_p8 }
  0x1c   :  { %2302 = shalt.err (!%p2299_p10)
}
  0x1d   :  { %s2303_s24 = scalar_lea.vmem %s2518_s27, 256  ;;  %p2308_p12 = scmp.lt.s32.totalorder %s2518_s27, %s2518_s27 }
  0x1e   :  { %p2304_p11 = scmp.ne.s32.totalorder %s2518_s27, %s2303_s24  ;;  %p2309_p13 = scmp.lt.s32.totalorder %s2303_s24, %s2303_s24 }
  0x20   :  { %p2310_p0 = por %p2309_p13, %p2308_p12 }
  0x22   :  { %p2311_p1 = pnand %p2310_p0, %p2304_p11 }
  0x24   :  { %2314 = shalt.err (!%p2311_p1)
}
  0x25   :  { %30 = dma.hbm_to_vmem [thread:$0]  %s2835_s0, 256, %s2518_s27, [#allocation7], %s2461_s13, %s2461_s13, %s2462_s14  }
  0x26   :  { %s2463_s26 = smov [#allocation11]   ;;  %s2315_s8 = scalar_lea.hbm %s2837_s2, 256 }
  0x27   :  { %s52_s28 = sshll.u32 %s2463_s26, 4  ;;  %p2316_p2 = scmp.ne.s32.totalorder %s2837_s2, %s2315_s8  ;;  %s53_s28 = int_to_ptr.vmem [resolvable:$true] %s52_s28 }
  0x28   :  { %p2319_p3 = scmp.lt.u32.totalorder %s2315_s8, %s2837_s2 }
  0x2a   :  { %p2321_p4 = pnand %p2319_p3, %p2316_p2 }
  0x2c   :  { %2324 = shalt.err (!%p2321_p4)
}
  0x2d   :  { %s2325_s15 = scalar_lea.vmem %s53_s28, 256  ;;  %p2330_p6 = scmp.lt.s32.totalorder %s53_s28, %s53_s28 }
  0x2e   :  { %p2326_p5 = scmp.ne.s32.totalorder %s53_s28, %s2325_s15  ;;  %p2331_p7 = scmp.lt.s32.totalorder %s2325_s15, %s2325_s15 }
  0x30   :  { %p2332_p8 = por %p2331_p7, %p2330_p6 }
  0x32   :  { %p2333_p9 = pnand %p2332_p8, %p2326_p5 }
  0x34   :  { %2336 = shalt.err (!%p2333_p9)
}
  0x35   :  { %s2464_s0 = smov 128   ;;  %s2465_s27 = smov 8  }
  0x36   :  { %58 = dma.hbm_to_vmem [thread:$0]  %s2837_s2, 256, %s53_s28, [#allocation10], %s2464_s0, %s2464_s0, %s2465_s27  }
  0x37   :  { %s2466_s18 = smov [#allocation12]   ;;  %s2337_s22 = scalar_lea.hbm %s2838_s3, 256 }
  0x38   :  { %s64_s19 = sshll.u32 %s2466_s18, 4  ;;  %p2338_p10 = scmp.ne.s32.totalorder %s2838_s3, %s2337_s22  ;;  %s65_s19 = int_to_ptr.vmem [resolvable:$true] %s64_s19 }
  0x39   :  { %p2341_p11 = scmp.lt.u32.totalorder %s2337_s22, %s2838_s3 }
  0x3b   :  { %p2343_p12 = pnand %p2341_p11, %p2338_p10 }
  0x3d   :  { %2346 = shalt.err (!%p2343_p12)
}
  0x3e   :  { %s2347_s26 = scalar_lea.vmem %s65_s19, 256  ;;  %p2352_p0 = scmp.lt.s32.totalorder %s65_s19, %s65_s19 }
  0x3f   :  { %p2348_p13 = scmp.ne.s32.totalorder %s65_s19, %s2347_s26  ;;  %p2353_p1 = scmp.lt.s32.totalorder %s2347_s26, %s2347_s26 }
  0x41   :  { %p2354_p2 = por %p2353_p1, %p2352_p0 }
  0x43   :  { %p2355_p3 = pnand %p2354_p2, %p2348_p13 }
  0x45   :  { %2358 = shalt.err (!%p2355_p3)
}
  0x46   :  { %70 = dma.hbm_to_vmem [thread:$0]  %s2838_s3, 256, %s65_s19, [#allocation13], %s2464_s0, %s2464_s0, %s2465_s27  }
  0x47   :  { %2447 = dma.done.wait [#allocation7], 256  }
  0x48   :  { %2448 = vsyncadd [#allocation7], 4294967040 }
  0x49   :  { %2449 = dma.done.wait [#allocation10], 512  }
  0x4a   :  { %2450 = vsyncadd [#allocation10], 4294966784 }
  0x4b   :  { %2451 = dma.done.wait [#allocation13], 256  }
  0x4c   :  { %2452 = vsyncadd [#allocation13], 4294967040  ;;  %vm91_vm0 = vcmask 123904   ;;  %v2467_v0 = vmov 0.0|0.0   ;;  %v2468_v1 = vmov 0.0   ;;  %vm2469_vm1 = vmmov 0  }
  0x4d   :  { %2079 = vmatprep.subr.bf16.mxu1 %v2467_v0  ;;  %2076 = vmatprep.subr.bf16.mxu0 %v2467_v0  ;;  %94 = vst.msk [vmem:[#allocation4] sm:$0x3] %vm91_vm0, %v2468_v1  ;;  %92 = vst.msk [vmem:[#allocation2] sm:$0x3] %vm91_vm0, %v2468_v1  ;;  %v98_v2 = vld [vmem:[#allocation12] sm:$0xff]  ;;  %v99_v3 = vld [vmem:[#allocation12 + $0x8] sm:$0xff] }
  0x4e   :  { %93 = vst.msk [vmem:[#allocation3] sm:$0x3] %vm91_vm0, %v2468_v1  ;;  %95 = vst.msk [vmem:[#allocation5] sm:$0x3] %vm91_vm0, %v2468_v1  ;;  %1975 = vmatprep.mubr.msk.f32.mxu1 %vm2469_vm1, %v2468_v1  ;;  %1968 = vmatprep.mubr.msk.f32.mxu0 %vm2469_vm1, %v2468_v1  ;;  %v96_v4 = vld [vmem:[#allocation11] sm:$0xff]  ;;  %v2593_v5 = vpack.c.bf16 %v99_v3, %v98_v2  ;;  %v97_v6 = vld [vmem:[#allocation11 + $0x8] sm:$0xff] }
  0x4f   :  { %v2595_v7 = vpack.c.bf16 %v97_v6, %v96_v4  ;;  %vm105_vm2 = vcmask 130048   ;;  %s2470_s3 = smov 16   ;;  %v215_v12 = vld [vmem:[#allocation9 + $0xe] sm:$0x3]  ;;  %v104_v13 = vld [vmem:[#allocation6] sm:$0x3] }
  0x50   :  { %2081 = vmatpush3.bf16.msra.mxu1 %v2593_v5  ;;  %s2471_s29 = smov 96   ;;  %s2472_s30 = smov 80   ;;  %v430_v50 = vld [vmem:[#allocation9 + $0xc] sm:$0x3]  ;;  %v325_v54 = vld [vmem:[#allocation6 + $0x2] sm:$0x3] }
  0x51   :  { %2078 = vmatpush3.bf16.msra.mxu0 %v2595_v7  ;;  %2085 = vmatprep.subr.bf16.mxu1 %v2467_v0  ;;  %s2473_s8 = smov 112   ;;  %s2474_s9 = smov [#allocation15]  }
  0x52   :  { %2082 = vmatprep.subr.bf16.mxu0 %v2467_v0  ;;  %s1831_s10 = sshll.u32 %s2474_s9, 4  ;;  %s2475_s11 = smov [#allocation14]   ;;  %s1832_s10 = int_to_ptr.vmem [resolvable:$true] %s1831_s10 }
  0x53   :  { %s1815_s12 = sshll.u32 %s2475_s11, 4  ;;  %s2476_s15 = smov [#allocation17]   ;;  %s1816_s12 = int_to_ptr.vmem [resolvable:$true] %s1815_s12 }
  0x54   :  { %v102_v9 = vld [vmem:[#allocation4] sm:$0x3]  ;;  %v100_v10 = vld [vmem:[#allocation2] sm:$0x3]  ;;  %s1843_s0 = sshll.u32 %s2476_s15, 4  ;;  %s2477_s27 = smov [#allocation18]   ;;  %s2769_s0 = int_to_ptr.vmem [resolvable:$true] %s1843_s0 }
  0x55   :  { %v103_v8 = vld [vmem:[#allocation5] sm:$0x3]  ;;  %v101_v11 = vld [vmem:[#allocation3] sm:$0x3]  ;;  %1976 = vmatmul.mubr.msk.f32.vlgmr.msra.gmra.mrb[0].mxu1 %vm105_vm2, %v102_v9  ;;  %1969 = vmatmul.mubr.msk.f32.vlgmr.msra.gmra.mrb[0].mxu0 %vm105_vm2, %v100_v10  ;;  %s1855_s16 = sshll.u32 %s2477_s27, 4  ;;  %s2359_s17 = scalar_lea.vmem %s1832_s10, 256  ;;  %s2776_s16 = int_to_ptr.vmem [resolvable:$true] %s1855_s16 }
  0x56   :  { %298 = vrot.lane.b32.xlu1 %v103_v8, %s2470_s3  ;;  %2087 = vmatpush3.bf16.msra.mxu1 %v2593_v5  ;;  %p2360_p4 = scmp.ne.s32.totalorder %s1832_s10, %s2359_s17  ;;  %p2364_p5 = scmp.lt.s32.totalorder %s1832_s10, %s1832_s10 }
  0x57   :  { %1989 = vmatprep.mubr.msk.f32.mxu1 %vm2469_vm1, %v2468_v1  ;;  %2084 = vmatpush3.bf16.msra.mxu0 %v2595_v7  ;;  %p2365_p6 = scmp.lt.s32.totalorder %s2359_s17, %s2359_s17 }
  0x58   :  { %1982 = vmatprep.mubr.msk.f32.mxu0 %vm2469_vm1, %v2468_v1  ;;  %2091 = vmatprep.subr.bf16.mxu1 %v2467_v0 }
  0x59   :  { %2088 = vmatprep.subr.bf16.mxu0 %v2467_v0  ;;  %p2366_p7 = por %p2365_p6, %p2364_p5 }
  0x5a   :  { %188 = vrot.lane.b32.xlu1 %v101_v11, %s2470_s3 }
  0x5b   :  { %p2367_p8 = pnand %p2366_p7, %p2360_p4 }
  0xc8   :  { %v299_v34 = vpop.permute.xlu1 %298 }
  0xcc   :  { %v189_v36 = vpop.permute.xlu1 %188 }
 0x128   :  { %v285_v14 = vpop.f32.mrb[0].mxu1  ;;  %v175_v17 = vpop.f32.mrb[0].mxu0 }
 0x129   :  { %v289_v15 = vadd.f32 %v285_v14, %v215_v12  ;;  %v1977_v16 = vpop.f32.mrb[1].mxu1  ;;  %v179_v18 = vadd.f32 %v175_v17, %v104_v13  ;;  %v1970_v19 = vpop.f32.mrb[1].mxu0 }
 0x12b   :  { %2143 = vtanh.f32 %v289_v15  ;;  %v1887_v22 = vmul.f32 -1.442695, %v289_v15  ;;  %v1885_v23 = vmul.f32 -1.442695, %v179_v18 }
 0x12c   :  { %2145 = vtanh.f32 %v179_v18 }
 0x12d   :  { %2147 = vpow2.f32 %v1887_v22 }
 0x12e   :  { %2149 = vpow2.f32 %v1885_v23 }
 0x135   :  { %v2144_v20 = vpop.eup %2143 }
 0x136   :  { %303 = vrot.lane.b32.xlu0 %v2144_v20, %s2471_s29  ;;  %v2146_v21 = vpop.eup %2145 }
 0x137   :  { %v2148_v24 = vpop.eup %2147 }
 0x138   :  { %v293_v25 = vadd.f32 1.0, %v2148_v24  ;;  %v2150_v26 = vpop.eup %2149 }
 0x139   :  { %v183_v27 = vadd.f32 1.0, %v2150_v26  ;;  %v640_v26 = vld [vmem:[#allocation9 + $0xa] sm:$0x3] }
 0x13a   :  { %193 = vrot.lane.b32.xlu0 %v2146_v21, %s2471_s29  ;;  %2151 = vrcp.f32 %v293_v25 }
 0x13b   :  { %2153 = vrcp.f32 %v183_v27 }
 0x144   :  { %v2152_v28 = vpop.eup %2151 }
 0x145   :  { %v2154_v31 = vpop.eup %2153  ;;  %v301_v35 = vmul.f32 %v2152_v28, %v299_v34 }
 0x146   :  { %v191_v39 = vmul.f32 %v2154_v31, %v189_v36 }
 0x1a8   :  { %v304_v29 = vpop.permute.xlu0 %303 }
 0x1a9   :  { %v306_v30 = vmul.f32 %v2152_v28, %v304_v29 }
 0x1ab   :  { %308 = vrot.lane.b32.xlu0 %v306_v30, %s2470_s3  ;;  %v535_v30 = vld [vmem:[#allocation6 + $0x4] sm:$0x3] }
 0x1ac   :  { %v194_v32 = vpop.permute.xlu0 %193 }
 0x1ad   :  { %v196_v33 = vmul.f32 %v2154_v31, %v194_v32 }
 0x1af   :  { %198 = vrot.lane.b32.xlu1 %v196_v33, %s2470_s3 }
 0x21d   :  { %v309_v37 = vpop.permute.xlu0 %308 }
 0x21e   :  { %v311_v38 = vadd.f32 %v309_v37, %v301_v35 }
 0x220   :  { %2155 = vtanh.f32 %v311_v38 }
 0x221   :  { %v199_v40 = vpop.permute.xlu1 %198 }
 0x222   :  { %v201_v41 = vadd.f32 %v199_v40, %v191_v39 }
 0x224   :  { %2157 = vtanh.f32 %v201_v41 }
 0x22a   :  { %v2156_v42 = vpop.eup %2155 }
 0x22b   :  { %314 = vrot.lane.b32.xlu0 %v2156_v42, %s2461_s13 }
 0x22e   :  { %v2158_v43 = vpop.eup %2157 }
 0x22f   :  { %204 = vrot.lane.b32.xlu1 %v2158_v43, %s2461_s13 }
 0x29d   :  { %v315_v44 = vpop.permute.xlu0 %314 }
 0x29e   :  { %v317_v45 = vmul.f32 %v2152_v28, %v315_v44 }
 0x2a0   :  { %319 = vrot.lane.b32.xlu0 %v317_v45, %s2472_s30 }
 0x2a1   :  { %v205_v46 = vpop.permute.xlu1 %204 }
 0x2a2   :  { %v207_v47 = vmul.f32 %v2154_v31, %v205_v46 }
 0x2a4   :  { %209 = vrot.lane.b32.xlu1 %v207_v47, %s2472_s30 }
 0x312   :  { %v320_v48 = vpop.permute.xlu0 %319 }
 0x313   :  { %323 = vst.msk [vmem:[#allocation15 + $0xe] sm:$0x3] %vm91_vm0, %v320_v48  ;;  %1990 = vmatmul.mubr.msk.f32.vlgmr.msra.gmra.mrb[2].mxu1 %vm105_vm2, %v320_v48 }
 0x314   :  { %2093 = vmatpush3.bf16.msra.mxu1 %v2593_v5  ;;  %2003 = vmatprep.mubr.msk.f32.mxu1 %vm2469_vm1, %v2468_v1 }
 0x315   :  { %2097 = vmatprep.subr.bf16.mxu1 %v2467_v0 }
 0x316   :  { %v210_v49 = vpop.permute.xlu1 %209 }
 0x317   :  { %213 = vst.msk [vmem:[#allocation14] sm:$0x3] %vm91_vm0, %v210_v49  ;;  %1983 = vmatmul.mubr.msk.f32.vlgmr.msra.gmra.mrb[2].mxu0 %vm105_vm2, %v210_v49 }
 0x318   :  { %2090 = vmatpush3.bf16.msra.mxu0 %v2595_v7  ;;  %1996 = vmatprep.mubr.msk.f32.mxu0 %vm2469_vm1, %v2468_v1 }
 0x319   :  { %2094 = vmatprep.subr.bf16.mxu0 %v2467_v0 }
 0x3e6   :  { %v499_v51 = vpop.f32.mrb[2].mxu1 }
 0x3e7   :  { %v503_v52 = vadd.f32 %v499_v51, %v430_v50  ;;  %v1991_v53 = vpop.f32.mrb[3].mxu1 }
 0x3e9   :  { %2159 = vtanh.f32 %v503_v52  ;;  %v1891_v60 = vmul.f32 -1.442695, %v503_v52 }
 0x3ea   :  { %v394_v55 = vpop.f32.mrb[2].mxu0 }
 0x3eb   :  { %v398_v56 = vadd.f32 %v394_v55, %v325_v54  ;;  %v1984_v57 = vpop.f32.mrb[3].mxu0 }
 0x3ed   :  { %2161 = vtanh.f32 %v398_v56  ;;  %v1889_v61 = vmul.f32 -1.442695, %v398_v56 }
 0x3ee   :  { %2163 = vpow2.f32 %v1891_v60 }
 0x3ef   :  { %2165 = vpow2.f32 %v1889_v61 }
 0x3f3   :  { %v2160_v58 = vpop.eup %2159 }
 0x3f4   :  { %513 = vrot.lane.b32.xlu0 %v2160_v58, %s2471_s29 }
 0x3f7   :  { %v2162_v59 = vpop.eup %2161 }
 0x3f8   :  { %408 = vrot.lane.b32.xlu1 %v2162_v59, %s2471_s29  ;;  %v2164_v62 = vpop.eup %2163 }
 0x3f9   :  { %v507_v63 = vadd.f32 1.0, %v2164_v62  ;;  %v2166_v2 = vpop.eup %2165  ;;  %v850_v62 = vld [vmem:[#allocation9 + $0x8] sm:$0x3] }
 0x3fa   :  { %v402_v3 = vadd.f32 1.0, %v2166_v2 }
 0x3fb   :  { %2167 = vrcp.f32 %v507_v63 }
 0x3fc   :  { %2169 = vrcp.f32 %v402_v3 }
 0x405   :  { %v2168_v4 = vpop.eup %2167 }
 0x406   :  { %v2170_v9 = vpop.eup %2169  ;;  %v511_v12 = vmul.f32 %v2168_v4, %v311_v38 }
 0x407   :  { %v406_v15 = vmul.f32 %v2170_v9, %v201_v41 }
 0x466   :  { %v514_v6 = vpop.permute.xlu0 %513 }
 0x467   :  { %v516_v8 = vmul.f32 %v2168_v4, %v514_v6 }
 0x469   :  { %518 = vrot.lane.b32.xlu0 %v516_v8, %s2470_s3 }
 0x46a   :  { %v409_v10 = vpop.permute.xlu1 %408 }
 0x46b   :  { %v411_v11 = vmul.f32 %v2170_v9, %v409_v10 }
 0x46d   :  { %413 = vrot.lane.b32.xlu1 %v411_v11, %s2470_s3 }
 0x4db   :  { %v519_v13 = vpop.permute.xlu0 %518 }
 0x4dc   :  { %v521_v14 = vadd.f32 %v519_v13, %v511_v12 }
 0x4de   :  { %2171 = vtanh.f32 %v521_v14 }
 0x4df   :  { %v414_v16 = vpop.permute.xlu1 %413 }
 0x4e0   :  { %v416_v17 = vadd.f32 %v414_v16, %v406_v15 }
 0x4e2   :  { %2173 = vtanh.f32 %v416_v17 }
 0x4e8   :  { %v2172_v18 = vpop.eup %2171 }
 0x4e9   :  { %524 = vrot.lane.b32.xlu0 %v2172_v18, %s2461_s13 }
 0x4ec   :  { %v2174_v19 = vpop.eup %2173 }
 0x4ed   :  { %419 = vrot.lane.b32.xlu1 %v2174_v19, %s2461_s13 }
 0x55b   :  { %v525_v20 = vpop.permute.xlu0 %524 }
 0x55c   :  { %v527_v21 = vmul.f32 %v2168_v4, %v525_v20  ;;  %v745_v4 = vld [vmem:[#allocation6 + $0x6] sm:$0x3] }
 0x55e   :  { %529 = vrot.lane.b32.xlu0 %v527_v21, %s2472_s30 }
 0x55f   :  { %v420_v22 = vpop.permute.xlu1 %419 }
 0x560   :  { %v422_v23 = vmul.f32 %v2170_v9, %v420_v22 }
 0x562   :  { %424 = vrot.lane.b32.xlu1 %v422_v23, %s2472_s30 }
 0x5d0   :  { %v530_v24 = vpop.permute.xlu0 %529 }
 0x5d1   :  { %533 = vst.msk [vmem:[#allocation15 + $0xc] sm:$0x3] %vm91_vm0, %v530_v24  ;;  %2004 = vmatmul.mubr.msk.f32.vlgmr.msra.gmra.mrb[4].mxu1 %vm105_vm2, %v530_v24 }
 0x5d2   :  { %2099 = vmatpush3.bf16.msra.mxu1 %v2593_v5  ;;  %2017 = vmatprep.mubr.msk.f32.mxu1 %vm2469_vm1, %v2468_v1 }
 0x5d3   :  { %2103 = vmatprep.subr.bf16.mxu1 %v2467_v0 }
 0x5d4   :  { %v425_v25 = vpop.permute.xlu1 %424 }
 0x5d5   :  { %428 = vst.msk [vmem:[#allocation14 + $0x2] sm:$0x3] %vm91_vm0, %v425_v25  ;;  %1997 = vmatmul.mubr.msk.f32.vlgmr.msra.gmra.mrb[4].mxu0 %vm105_vm2, %v425_v25 }
 0x5d6   :  { %2096 = vmatpush3.bf16.msra.mxu0 %v2595_v7  ;;  %2010 = vmatprep.mubr.msk.f32.mxu0 %vm2469_vm1, %v2468_v1 }
 0x5d7   :  { %2100 = vmatprep.subr.bf16.mxu0 %v2467_v0 }
 0x6a4   :  { %v709_v27 = vpop.f32.mrb[4].mxu1 }
 0x6a5   :  { %v713_v28 = vadd.f32 %v709_v27, %v640_v26  ;;  %v2005_v29 = vpop.f32.mrb[5].mxu1 }
 0x6a7   :  { %2175 = vtanh.f32 %v713_v28  ;;  %v1895_v36 = vmul.f32 -1.442695, %v713_v28 }
 0x6a8   :  { %v604_v31 = vpop.f32.mrb[4].mxu0 }
 0x6a9   :  { %v608_v32 = vadd.f32 %v604_v31, %v535_v30  ;;  %v1998_v33 = vpop.f32.mrb[5].mxu0 }
 0x6ab   :  { %2177 = vtanh.f32 %v608_v32  ;;  %v1893_v37 = vmul.f32 -1.442695, %v608_v32 }
 0x6ac   :  { %2179 = vpow2.f32 %v1895_v36 }
 0x6ad   :  { %2181 = vpow2.f32 %v1893_v37 }
 0x6b1   :  { %v2176_v34 = vpop.eup %2175 }
 0x6b2   :  { %723 = vrot.lane.b32.xlu0 %v2176_v34, %s2471_s29 }
 0x6b5   :  { %v2178_v35 = vpop.eup %2177 }
 0x6b6   :  { %618 = vrot.lane.b32.xlu1 %v2178_v35, %s2471_s29  ;;  %v2180_v38 = vpop.eup %2179 }
 0x6b7   :  { %v717_v39 = vadd.f32 1.0, %v2180_v38  ;;  %v2182_v40 = vpop.eup %2181  ;;  %v1060_v38 = vld [vmem:[#allocation9 + $0x6] sm:$0x3] }
 0x6b8   :  { %v612_v41 = vadd.f32 1.0, %v2182_v40 }
 0x6b9   :  { %2183 = vrcp.f32 %v717_v39 }
 0x6ba   :  { %2185 = vrcp.f32 %v612_v41 }
 0x6c3   :  { %v2184_v42 = vpop.eup %2183 }
 0x6c4   :  { %v2186_v45 = vpop.eup %2185  ;;  %v721_v48 = vmul.f32 %v2184_v42, %v521_v14 }
 0x6c5   :  { %v616_v51 = vmul.f32 %v2186_v45, %v416_v17 }
 0x724   :  { %v724_v43 = vpop.permute.xlu0 %723 }
 0x725   :  { %v726_v44 = vmul.f32 %v2184_v42, %v724_v43 }
 0x727   :  { %728 = vrot.lane.b32.xlu0 %v726_v44, %s2470_s3 }
 0x728   :  { %v619_v46 = vpop.permute.xlu1 %618 }
 0x729   :  { %v621_v47 = vmul.f32 %v2186_v45, %v619_v46 }
 0x72b   :  { %623 = vrot.lane.b32.xlu1 %v621_v47, %s2470_s3 }
 0x799   :  { %v729_v49 = vpop.permute.xlu0 %728 }
 0x79a   :  { %v731_v50 = vadd.f32 %v729_v49, %v721_v48 }
 0x79c   :  { %2187 = vtanh.f32 %v731_v50 }
 0x79d   :  { %v624_v52 = vpop.permute.xlu1 %623 }
 0x79e   :  { %v626_v53 = vadd.f32 %v624_v52, %v616_v51 }
 0x7a0   :  { %2189 = vtanh.f32 %v626_v53 }
 0x7a6   :  { %v2188_v54 = vpop.eup %2187 }
 0x7a7   :  { %734 = vrot.lane.b32.xlu0 %v2188_v54, %s2461_s13 }
 0x7aa   :  { %v2190_v55 = vpop.eup %2189 }
 0x7ab   :  { %629 = vrot.lane.b32.xlu1 %v2190_v55, %s2461_s13 }
 0x819   :  { %v735_v56 = vpop.permute.xlu0 %734 }
 0x81a   :  { %v737_v57 = vmul.f32 %v2184_v42, %v735_v56  ;;  %v955_v42 = vld [vmem:[#allocation6 + $0x8] sm:$0x3] }
 0x81c   :  { %739 = vrot.lane.b32.xlu0 %v737_v57, %s2472_s30 }
 0x81d   :  { %v630_v58 = vpop.permute.xlu1 %629 }
 0x81e   :  { %v632_v59 = vmul.f32 %v2186_v45, %v630_v58 }
 0x820   :  { %634 = vrot.lane.b32.xlu1 %v632_v59, %s2472_s30 }
 0x88e   :  { %v740_v60 = vpop.permute.xlu0 %739 }
 0x88f   :  { %743 = vst.msk [vmem:[#allocation15 + $0xa] sm:$0x3] %vm91_vm0, %v740_v60  ;;  %2018 = vmatmul.mubr.msk.f32.vlgmr.msra.gmra.mrb[6].mxu1 %vm105_vm2, %v740_v60 }
 0x890   :  { %2105 = vmatpush3.bf16.msra.mxu1 %v2593_v5  ;;  %2031 = vmatprep.mubr.msk.f32.mxu1 %vm2469_vm1, %v2468_v1 }
 0x891   :  { %2109 = vmatprep.subr.bf16.mxu1 %v2467_v0 }
 0x892   :  { %v635_v61 = vpop.permute.xlu1 %634 }
 0x893   :  { %638 = vst.msk [vmem:[#allocation14 + $0x4] sm:$0x3] %vm91_vm0, %v635_v61  ;;  %2011 = vmatmul.mubr.msk.f32.vlgmr.msra.gmra.mrb[6].mxu0 %vm105_vm2, %v635_v61 }
 0x894   :  { %2102 = vmatpush3.bf16.msra.mxu0 %v2595_v7  ;;  %2024 = vmatprep.mubr.msk.f32.mxu0 %vm2469_vm1, %v2468_v1 }
 0x895   :  { %2106 = vmatprep.subr.bf16.mxu0 %v2467_v0 }
 0x962   :  { %v919_v63 = vpop.f32.mrb[6].mxu1 }
 0x963   :  { %v923_v2 = vadd.f32 %v919_v63, %v850_v62  ;;  %v2019_v3 = vpop.f32.mrb[7].mxu1 }
 0x965   :  { %2191 = vtanh.f32 %v923_v2  ;;  %v1899_v12 = vmul.f32 -1.442695, %v923_v2 }
 0x966   :  { %v814_v6 = vpop.f32.mrb[6].mxu0 }
 0x967   :  { %v818_v8 = vadd.f32 %v814_v6, %v745_v4  ;;  %v2012_v9 = vpop.f32.mrb[7].mxu0 }
 0x969   :  { %2193 = vtanh.f32 %v818_v8  ;;  %v1897_v13 = vmul.f32 -1.442695, %v818_v8 }
 0x96a   :  { %2195 = vpow2.f32 %v1899_v12 }
 0x96b   :  { %2197 = vpow2.f32 %v1897_v13 }
 0x96f   :  { %v2192_v10 = vpop.eup %2191 }
 0x970   :  { %933 = vrot.lane.b32.xlu0 %v2192_v10, %s2471_s29 }
 0x973   :  { %v2194_v11 = vpop.eup %2193 }
 0x974   :  { %828 = vrot.lane.b32.xlu1 %v2194_v11, %s2471_s29  ;;  %v2196_v14 = vpop.eup %2195 }
 0x975   :  { %v927_v15 = vadd.f32 1.0, %v2196_v14  ;;  %v2198_v16 = vpop.eup %2197  ;;  %v1270_v14 = vld [vmem:[#allocation9 + $0x4] sm:$0x3] }
 0x976   :  { %v822_v17 = vadd.f32 1.0, %v2198_v16 }
 0x977   :  { %2199 = vrcp.f32 %v927_v15 }
 0x978   :  { %2201 = vrcp.f32 %v822_v17 }
 0x981   :  { %v2200_v18 = vpop.eup %2199 }
 0x982   :  { %v2202_v21 = vpop.eup %2201  ;;  %v931_v24 = vmul.f32 %v2200_v18, %v731_v50 }
 0x983   :  { %v826_v27 = vmul.f32 %v2202_v21, %v626_v53 }
 0x9e2   :  { %v934_v19 = vpop.permute.xlu0 %933 }
 0x9e3   :  { %v936_v20 = vmul.f32 %v2200_v18, %v934_v19 }
 0x9e5   :  { %938 = vrot.lane.b32.xlu0 %v936_v20, %s2470_s3 }
 0x9e6   :  { %v829_v22 = vpop.permute.xlu1 %828 }
 0x9e7   :  { %v831_v23 = vmul.f32 %v2202_v21, %v829_v22 }
 0x9e9   :  { %833 = vrot.lane.b32.xlu1 %v831_v23, %s2470_s3 }
 0xa57   :  { %v939_v25 = vpop.permute.xlu0 %938 }
 0xa58   :  { %v941_v26 = vadd.f32 %v939_v25, %v931_v24 }
 0xa5a   :  { %2203 = vtanh.f32 %v941_v26 }
 0xa5b   :  { %v834_v28 = vpop.permute.xlu1 %833 }
 0xa5c   :  { %v836_v29 = vadd.f32 %v834_v28, %v826_v27 }
 0xa5e   :  { %2205 = vtanh.f32 %v836_v29 }
 0xa64   :  { %v2204_v30 = vpop.eup %2203 }
 0xa65   :  { %944 = vrot.lane.b32.xlu0 %v2204_v30, %s2461_s13 }
 0xa68   :  { %v2206_v31 = vpop.eup %2205 }
 0xa69   :  { %839 = vrot.lane.b32.xlu1 %v2206_v31, %s2461_s13 }
 0xad7   :  { %v945_v32 = vpop.permute.xlu0 %944 }
 0xad8   :  { %v947_v33 = vmul.f32 %v2200_v18, %v945_v32  ;;  %v1165_v18 = vld [vmem:[#allocation6 + $0xa] sm:$0x3] }
 0xada   :  { %949 = vrot.lane.b32.xlu0 %v947_v33, %s2472_s30 }
 0xadb   :  { %v840_v34 = vpop.permute.xlu1 %839 }
 0xadc   :  { %v842_v35 = vmul.f32 %v2202_v21, %v840_v34 }
 0xade   :  { %844 = vrot.lane.b32.xlu1 %v842_v35, %s2472_s30 }
 0xb4c   :  { %v950_v36 = vpop.permute.xlu0 %949 }
 0xb4d   :  { %953 = vst.msk [vmem:[#allocation15 + $0x8] sm:$0x3] %vm91_vm0, %v950_v36  ;;  %2032 = vmatmul.mubr.msk.f32.vlgmr.msra.gmra.mrb[8].mxu1 %vm105_vm2, %v950_v36 }
 0xb4e   :  { %2111 = vmatpush3.bf16.msra.mxu1 %v2593_v5  ;;  %2045 = vmatprep.mubr.msk.f32.mxu1 %vm2469_vm1, %v2468_v1 }
 0xb4f   :  { %2115 = vmatprep.subr.bf16.mxu1 %v2467_v0 }
 0xb50   :  { %v845_v37 = vpop.permute.xlu1 %844 }
 0xb51   :  { %848 = vst.msk [vmem:[#allocation14 + $0x6] sm:$0x3] %vm91_vm0, %v845_v37  ;;  %2025 = vmatmul.mubr.msk.f32.vlgmr.msra.gmra.mrb[8].mxu0 %vm105_vm2, %v845_v37 }
 0xb52   :  { %2108 = vmatpush3.bf16.msra.mxu0 %v2595_v7  ;;  %2038 = vmatprep.mubr.msk.f32.mxu0 %vm2469_vm1, %v2468_v1 }
 0xb53   :  { %2112 = vmatprep.subr.bf16.mxu0 %v2467_v0 }
 0xc20   :  { %v1129_v39 = vpop.f32.mrb[8].mxu1 }
 0xc21   :  { %v1133_v40 = vadd.f32 %v1129_v39, %v1060_v38  ;;  %v2033_v41 = vpop.f32.mrb[9].mxu1 }
 0xc23   :  { %2207 = vtanh.f32 %v1133_v40  ;;  %v1903_v48 = vmul.f32 -1.442695, %v1133_v40 }
 0xc24   :  { %v1024_v43 = vpop.f32.mrb[8].mxu0 }
 0xc25   :  { %v1028_v44 = vadd.f32 %v1024_v43, %v955_v42  ;;  %v2026_v45 = vpop.f32.mrb[9].mxu0 }
 0xc27   :  { %2209 = vtanh.f32 %v1028_v44  ;;  %v1901_v49 = vmul.f32 -1.442695, %v1028_v44 }
 0xc28   :  { %2211 = vpow2.f32 %v1903_v48 }
 0xc29   :  { %2213 = vpow2.f32 %v1901_v49  ;;  %v1480_v49 = vld [vmem:[#allocation9 + $0x2] sm:$0x3] }
 0xc2d   :  { %v2208_v46 = vpop.eup %2207 }
 0xc2e   :  { %1143 = vrot.lane.b32.xlu0 %v2208_v46, %s2471_s29 }
 0xc31   :  { %v2210_v47 = vpop.eup %2209 }
 0xc32   :  { %1038 = vrot.lane.b32.xlu1 %v2210_v47, %s2471_s29  ;;  %v2212_v50 = vpop.eup %2211 }
 0xc33   :  { %v1137_v51 = vadd.f32 1.0, %v2212_v50  ;;  %v2214_v52 = vpop.eup %2213 }
 0xc34   :  { %v1032_v53 = vadd.f32 1.0, %v2214_v52 }
 0xc35   :  { %2215 = vrcp.f32 %v1137_v51 }
 0xc36   :  { %2217 = vrcp.f32 %v1032_v53  ;;  %v1375_v53 = vld [vmem:[#allocation6 + $0xc] sm:$0x3] }
 0xc3f   :  { %v2216_v54 = vpop.eup %2215 }
 0xc40   :  { %v2218_v57 = vpop.eup %2217  ;;  %v1141_v60 = vmul.f32 %v2216_v54, %v941_v26 }
 0xc41   :  { %v1036_v63 = vmul.f32 %v2218_v57, %v836_v29 }
 0xca0   :  { %v1144_v55 = vpop.permute.xlu0 %1143 }
 0xca1   :  { %v1146_v56 = vmul.f32 %v2216_v54, %v1144_v55 }
 0xca3   :  { %1148 = vrot.lane.b32.xlu0 %v1146_v56, %s2470_s3 }
 0xca4   :  { %v1039_v58 = vpop.permute.xlu1 %1038 }
 0xca5   :  { %v1041_v59 = vmul.f32 %v2218_v57, %v1039_v58 }
 0xca7   :  { %1043 = vrot.lane.b32.xlu1 %v1041_v59, %s2470_s3 }
 0xd15   :  { %v1149_v61 = vpop.permute.xlu0 %1148 }
 0xd16   :  { %v1151_v62 = vadd.f32 %v1149_v61, %v1141_v60 }
 0xd18   :  { %2219 = vtanh.f32 %v1151_v62 }
 0xd19   :  { %v1044_v2 = vpop.permute.xlu1 %1043 }
 0xd1a   :  { %v1046_v3 = vadd.f32 %v1044_v2, %v1036_v63 }
 0xd1c   :  { %2221 = vtanh.f32 %v1046_v3 }
 0xd22   :  { %v2220_v4 = vpop.eup %2219 }
 0xd23   :  { %1154 = vrot.lane.b32.xlu0 %v2220_v4, %s2461_s13 }
 0xd26   :  { %v2222_v6 = vpop.eup %2221 }
 0xd27   :  { %1049 = vrot.lane.b32.xlu1 %v2222_v6, %s2461_s13 }
 0xd95   :  { %v1155_v8 = vpop.permute.xlu0 %1154 }
 0xd96   :  { %v1157_v9 = vmul.f32 %v2216_v54, %v1155_v8 }
 0xd98   :  { %1159 = vrot.lane.b32.xlu0 %v1157_v9, %s2472_s30 }
 0xd99   :  { %v1050_v10 = vpop.permute.xlu1 %1049 }
 0xd9a   :  { %v1052_v11 = vmul.f32 %v2218_v57, %v1050_v10 }
 0xd9c   :  { %1054 = vrot.lane.b32.xlu1 %v1052_v11, %s2472_s30 }
 0xe0a   :  { %v1160_v12 = vpop.permute.xlu0 %1159 }
 0xe0b   :  { %1163 = vst.msk [vmem:[#allocation15 + $0x6] sm:$0x3] %vm91_vm0, %v1160_v12  ;;  %2046 = vmatmul.mubr.msk.f32.vlgmr.msra.gmra.mrb[10].mxu1 %vm105_vm2, %v1160_v12 }
 0xe0c   :  { %2117 = vmatpush3.bf16.msra.mxu1 %v2593_v5  ;;  %2059 = vmatprep.mubr.msk.f32.mxu1 %vm2469_vm1, %v2468_v1 }
 0xe0d   :  { %2121 = vmatprep.subr.bf16.mxu1 %v2467_v0 }
 0xe0e   :  { %v1055_v13 = vpop.permute.xlu1 %1054 }
 0xe0f   :  { %1058 = vst.msk [vmem:[#allocation14 + $0x8] sm:$0x3] %vm91_vm0, %v1055_v13  ;;  %2039 = vmatmul.mubr.msk.f32.vlgmr.msra.gmra.mrb[10].mxu0 %vm105_vm2, %v1055_v13 }
 0xe10   :  { %2114 = vmatpush3.bf16.msra.mxu0 %v2595_v7  ;;  %2052 = vmatprep.mubr.msk.f32.mxu0 %vm2469_vm1, %v2468_v1 }
 0xe11   :  { %2118 = vmatprep.subr.bf16.mxu0 %v2467_v0 }
 0xede   :  { %v1339_v15 = vpop.f32.mrb[10].mxu1 }
 0xedf   :  { %v1343_v16 = vadd.f32 %v1339_v15, %v1270_v14  ;;  %v2047_v17 = vpop.f32.mrb[11].mxu1 }
 0xee1   :  { %2223 = vtanh.f32 %v1343_v16  ;;  %v1907_v24 = vmul.f32 -1.442695, %v1343_v16 }
 0xee2   :  { %v1234_v19 = vpop.f32.mrb[10].mxu0 }
 0xee3   :  { %v1238_v20 = vadd.f32 %v1234_v19, %v1165_v18  ;;  %v2040_v21 = vpop.f32.mrb[11].mxu0 }
 0xee5   :  { %2225 = vtanh.f32 %v1238_v20  ;;  %v1905_v25 = vmul.f32 -1.442695, %v1238_v20 }
 0xee6   :  { %2227 = vpow2.f32 %v1907_v24 }
 0xee7   :  { %2229 = vpow2.f32 %v1905_v25 }
 0xeeb   :  { %v2224_v22 = vpop.eup %2223 }
 0xeec   :  { %1353 = vrot.lane.b32.xlu0 %v2224_v22, %s2471_s29  ;;  %v1689_v22 = vld [vmem:[#allocation9] sm:$0x3] }
 0xeef   :  { %v2226_v23 = vpop.eup %2225 }
 0xef0   :  { %1248 = vrot.lane.b32.xlu1 %v2226_v23, %s2471_s29  ;;  %v2228_v0 = vpop.eup %2227 }
 0xef1   :  { %v1347_v26 = vadd.f32 1.0, %v2228_v0  ;;  %v2230_v27 = vpop.eup %2229  ;;  %v1585_v0 = vld [vmem:[#allocation6 + $0xe] sm:$0x3] }
 0xef2   :  { %v1242_v28 = vadd.f32 1.0, %v2230_v27 }
 0xef3   :  { %2231 = vrcp.f32 %v1347_v26 }
 0xef4   :  { %2233 = vrcp.f32 %v1242_v28 }
 0xefd   :  { %v2232_v29 = vpop.eup %2231 }
 0xefe   :  { %v2234_v32 = vpop.eup %2233  ;;  %v1351_v35 = vmul.f32 %v2232_v29, %v1151_v62 }
 0xeff   :  { %v1246_v38 = vmul.f32 %v2234_v32, %v1046_v3 }
 0xf5e   :  { %v1354_v30 = vpop.permute.xlu0 %1353 }
 0xf5f   :  { %v1356_v31 = vmul.f32 %v2232_v29, %v1354_v30 }
 0xf61   :  { %1358 = vrot.lane.b32.xlu0 %v1356_v31, %s2470_s3 }
 0xf62   :  { %v1249_v33 = vpop.permute.xlu1 %1248 }
 0xf63   :  { %v1251_v34 = vmul.f32 %v2234_v32, %v1249_v33 }
 0xf65   :  { %1253 = vrot.lane.b32.xlu1 %v1251_v34, %s2470_s3 }
 0xfd3   :  { %v1359_v36 = vpop.permute.xlu0 %1358 }
 0xfd4   :  { %v1361_v37 = vadd.f32 %v1359_v36, %v1351_v35 }
 0xfd6   :  { %2235 = vtanh.f32 %v1361_v37 }
 0xfd7   :  { %v1254_v39 = vpop.permute.xlu1 %1253 }
 0xfd8   :  { %v1256_v40 = vadd.f32 %v1254_v39, %v1246_v38 }
 0xfda   :  { %2237 = vtanh.f32 %v1256_v40 }
 0xfe0   :  { %v2236_v41 = vpop.eup %2235 }
 0xfe1   :  { %1364 = vrot.lane.b32.xlu0 %v2236_v41, %s2461_s13 }
 0xfe4   :  { %v2238_v42 = vpop.eup %2237 }
 0xfe5   :  { %1259 = vrot.lane.b32.xlu1 %v2238_v42, %s2461_s13 }
0x1053   :  { %v1365_v43 = vpop.permute.xlu0 %1364 }
0x1054   :  { %v1367_v44 = vmul.f32 %v2232_v29, %v1365_v43 }
0x1056   :  { %1369 = vrot.lane.b32.xlu0 %v1367_v44, %s2472_s30 }
0x1057   :  { %v1260_v45 = vpop.permute.xlu1 %1259 }
0x1058   :  { %v1262_v46 = vmul.f32 %v2234_v32, %v1260_v45 }
0x105a   :  { %1264 = vrot.lane.b32.xlu1 %v1262_v46, %s2472_s30 }
0x10c8   :  { %v1370_v47 = vpop.permute.xlu0 %1369 }
0x10c9   :  { %1373 = vst.msk [vmem:[#allocation15 + $0x4] sm:$0x3] %vm91_vm0, %v1370_v47  ;;  %2060 = vmatmul.mubr.msk.f32.vlgmr.msra.gmra.mrb[12].mxu1 %vm105_vm2, %v1370_v47 }
0x10ca   :  { %2123 = vmatpush3.bf16.msra.mxu1 %v2593_v5  ;;  %2073 = vmatprep.mubr.msk.f32.mxu1 %vm2469_vm1, %v2468_v1 }
0x10cc   :  { %v1265_v48 = vpop.permute.xlu1 %1264 }
0x10cd   :  { %1268 = vst.msk [vmem:[#allocation14 + $0xa] sm:$0x3] %vm91_vm0, %v1265_v48  ;;  %2053 = vmatmul.mubr.msk.f32.vlgmr.msra.gmra.mrb[12].mxu0 %vm105_vm2, %v1265_v48 }
0x10ce   :  { %2120 = vmatpush3.bf16.msra.mxu0 %v2595_v7  ;;  %2066 = vmatprep.mubr.msk.f32.mxu0 %vm2469_vm1, %v2468_v1 }
0x119c   :  { %v1549_v50 = vpop.f32.mrb[12].mxu1 }
0x119d   :  { %v1553_v51 = vadd.f32 %v1549_v50, %v1480_v49  ;;  %v2061_v52 = vpop.f32.mrb[13].mxu1 }
0x119f   :  { %2239 = vtanh.f32 %v1553_v51  ;;  %v1911_v7 = vmul.f32 -1.442695, %v1553_v51 }
0x11a0   :  { %v1444_v5 = vpop.f32.mrb[12].mxu0 }
0x11a1   :  { %v1448_v54 = vadd.f32 %v1444_v5, %v1375_v53  ;;  %v2054_v55 = vpop.f32.mrb[13].mxu0 }
0x11a3   :  { %2241 = vtanh.f32 %v1448_v54  ;;  %v1909_v58 = vmul.f32 -1.442695, %v1448_v54 }
0x11a4   :  { %2243 = vpow2.f32 %v1911_v7 }
0x11a5   :  { %2245 = vpow2.f32 %v1909_v58 }
0x11a9   :  { %v2240_v56 = vpop.eup %2239 }
0x11aa   :  { %1563 = vrot.lane.b32.xlu0 %v2240_v56, %s2471_s29 }
0x11ad   :  { %v2242_v57 = vpop.eup %2241 }
0x11ae   :  { %1458 = vrot.lane.b32.xlu1 %v2242_v57, %s2471_s29  ;;  %v2244_v1 = vpop.eup %2243 }
0x11af   :  { %v1557_v59 = vadd.f32 1.0, %v2244_v1  ;;  %v2246_v60 = vpop.eup %2245 }
0x11b0   :  { %v1452_v61 = vadd.f32 1.0, %v2246_v60 }
0x11b1   :  { %2247 = vrcp.f32 %v1557_v59 }
0x11b2   :  { %2249 = vrcp.f32 %v1452_v61 }
0x11bb   :  { %v2248_v62 = vpop.eup %2247 }
0x11bc   :  { %v2250_v3 = vpop.eup %2249  ;;  %v1561_v8 = vmul.f32 %v2248_v62, %v1361_v37 }
0x11bd   :  { %v1456_v11 = vmul.f32 %v2250_v3, %v1256_v40 }
0x121c   :  { %v1564_v63 = vpop.permute.xlu0 %1563 }
0x121d   :  { %v1566_v2 = vmul.f32 %v2248_v62, %v1564_v63 }
0x121f   :  { %1568 = vrot.lane.b32.xlu0 %v1566_v2, %s2470_s3 }
0x1220   :  { %v1459_v4 = vpop.permute.xlu1 %1458 }
0x1221   :  { %v1461_v6 = vmul.f32 %v2250_v3, %v1459_v4 }
0x1223   :  { %1463 = vrot.lane.b32.xlu1 %v1461_v6, %s2470_s3 }
0x1291   :  { %v1569_v9 = vpop.permute.xlu0 %1568 }
0x1292   :  { %v1571_v10 = vadd.f32 %v1569_v9, %v1561_v8 }
0x1294   :  { %2251 = vtanh.f32 %v1571_v10 }
0x1295   :  { %v1464_v12 = vpop.permute.xlu1 %1463 }
0x1296   :  { %v1466_v13 = vadd.f32 %v1464_v12, %v1456_v11 }
0x1298   :  { %2253 = vtanh.f32 %v1466_v13 }
0x129e   :  { %v2252_v14 = vpop.eup %2251 }
0x129f   :  { %1574 = vrot.lane.b32.xlu0 %v2252_v14, %s2461_s13 }
0x12a2   :  { %v2254_v15 = vpop.eup %2253 }
0x12a3   :  { %1469 = vrot.lane.b32.xlu1 %v2254_v15, %s2461_s13 }
0x1311   :  { %v1575_v16 = vpop.permute.xlu0 %1574 }
0x1312   :  { %v1577_v17 = vmul.f32 %v2248_v62, %v1575_v16 }
0x1314   :  { %1579 = vrot.lane.b32.xlu0 %v1577_v17, %s2472_s30 }
0x1315   :  { %v1470_v18 = vpop.permute.xlu1 %1469 }
0x1316   :  { %v1472_v19 = vmul.f32 %v2250_v3, %v1470_v18 }
0x1318   :  { %1474 = vrot.lane.b32.xlu1 %v1472_v19, %s2472_s30 }
0x1386   :  { %v1580_v20 = vpop.permute.xlu0 %1579 }
0x1387   :  { %1583 = vst.msk [vmem:[#allocation15 + $0x2] sm:$0x3] %vm91_vm0, %v1580_v20  ;;  %2074 = vmatmul.mubr.msk.f32.vlgmr.msra.gmra.mrb[14].mxu1 %vm105_vm2, %v1580_v20 }
0x138a   :  { %v1475_v21 = vpop.permute.xlu1 %1474 }
0x138b   :  { %1478 = vst.msk [vmem:[#allocation14 + $0xc] sm:$0x3] %vm91_vm0, %v1475_v21  ;;  %2067 = vmatmul.mubr.msk.f32.vlgmr.msra.gmra.mrb[14].mxu0 %vm105_vm2, %v1475_v21 }
0x145a   :  { %v1758_v23 = vpop.f32.mrb[14].mxu1 }
0x145b   :  { %v1762_v24 = vadd.f32 %v1758_v23, %v1689_v22  ;;  %v2075_v25 = vpop.f32.mrb[15].mxu1 }
0x145d   :  { %2255 = vtanh.f32 %v1762_v24  ;;  %v1915_v31 = vmul.f32 -1.442695, %v1762_v24 }
0x145e   :  { %v1654_v26 = vpop.f32.mrb[14].mxu0 }
0x145f   :  { %v1658_v27 = vadd.f32 %v1654_v26, %v1585_v0  ;;  %v2068_v28 = vpop.f32.mrb[15].mxu0 }
0x1461   :  { %2257 = vtanh.f32 %v1658_v27  ;;  %v1913_v32 = vmul.f32 -1.442695, %v1658_v27 }
0x1462   :  { %2259 = vpow2.f32 %v1915_v31 }
0x1463   :  { %2261 = vpow2.f32 %v1913_v32 }
0x1467   :  { %v2256_v29 = vpop.eup %2255 }
0x1468   :  { %1772 = vrot.lane.b32.xlu0 %v2256_v29, %s2471_s29 }
0x146b   :  { %v2258_v30 = vpop.eup %2257 }
0x146c   :  { %1668 = vrot.lane.b32.xlu1 %v2258_v30, %s2471_s29  ;;  %v2260_v33 = vpop.eup %2259 }
0x146d   :  { %v1766_v34 = vadd.f32 1.0, %v2260_v33  ;;  %v2262_v35 = vpop.eup %2261 }
0x146e   :  { %v1662_v36 = vadd.f32 1.0, %v2262_v35 }
0x146f   :  { %2263 = vrcp.f32 %v1766_v34 }
0x1470   :  { %2265 = vrcp.f32 %v1662_v36 }
0x1479   :  { %v2264_v37 = vpop.eup %2263 }
0x147a   :  { %v2266_v40 = vpop.eup %2265  ;;  %v1770_v43 = vmul.f32 %v2264_v37, %v1571_v10 }
0x147b   :  { %v1666_v46 = vmul.f32 %v2266_v40, %v1466_v13 }
0x14da   :  { %v1773_v38 = vpop.permute.xlu0 %1772 }
0x14db   :  { %v1775_v39 = vmul.f32 %v2264_v37, %v1773_v38 }
0x14dd   :  { %1777 = vrot.lane.b32.xlu0 %v1775_v39, %s2470_s3 }
0x14de   :  { %v1669_v41 = vpop.permute.xlu1 %1668 }
0x14df   :  { %v1671_v42 = vmul.f32 %v2266_v40, %v1669_v41 }
0x14e1   :  { %1673 = vrot.lane.b32.xlu1 %v1671_v42, %s2470_s3 }
0x154f   :  { %v1778_v44 = vpop.permute.xlu0 %1777 }
0x1550   :  { %v1780_v45 = vadd.f32 %v1778_v44, %v1770_v43 }
0x1552   :  { %2267 = vtanh.f32 %v1780_v45 }
0x1553   :  { %v1674_v47 = vpop.permute.xlu1 %1673 }
0x1554   :  { %v1676_v48 = vadd.f32 %v1674_v47, %v1666_v46 }
0x1556   :  { %2269 = vtanh.f32 %v1676_v48 }
0x155c   :  { %v2268_v49 = vpop.eup %2267 }
0x155d   :  { %1783 = vrot.lane.b32.xlu0 %v2268_v49, %s2461_s13 }
0x1560   :  { %v2270_v50 = vpop.eup %2269 }
0x1561   :  { %1679 = vrot.lane.b32.xlu1 %v2270_v50, %s2461_s13 }
0x15cf   :  { %v1784_v51 = vpop.permute.xlu0 %1783 }
0x15d0   :  { %v1786_v52 = vmul.f32 %v2264_v37, %v1784_v51 }
0x15d2   :  { %1788 = vrot.lane.b32.xlu0 %v1786_v52, %s2472_s30 }
0x15d3   :  { %v1680_v53 = vpop.permute.xlu1 %1679 }
0x15d4   :  { %v1682_v5 = vmul.f32 %v2266_v40, %v1680_v53 }
0x15d6   :  { %1794 = vrot.lane.b32.xlu0 %v1676_v48, %s2473_s8  ;;  %1684 = vrot.lane.b32.xlu1 %v1682_v5, %s2472_s30 }
0x15da   :  { %1800 = vrot.lane.b32.xlu1 %v1780_v45, %s2473_s8 }
0x1644   :  { %v1789_v54 = vpop.permute.xlu0 %1788 }
0x1645   :  { %1791 = vst.msk [vmem:[#allocation15] sm:$0x3] %vm91_vm0, %v1789_v54  ;;  %1798 = vst.msk [vmem:[#allocation4] sm:$0x3] %vm91_vm0, %v1789_v54 }
0x1646   :  { %1806 = vst.msk [vmem:[#allocation17 + $0x2] sm:$0x3] %vm91_vm0, %v1789_v54 }
0x1647   :  { %2370 = shalt.err (!%p2367_p8)
}
0x1648   :  { %s2371_s20 = scalar_lea.hbm %s2840_s5, 256 }
0x1649   :  { %p2372_p9 = scmp.ne.s32.totalorder %s2840_s5, %s2371_s20  ;;  %p2375_p10 = scmp.lt.u32.totalorder %s2371_s20, %s2840_s5 }
0x164b   :  { %p2377_p11 = pnand %p2375_p10, %p2372_p9 }
0x164d   :  { %2380 = shalt.err (!%p2377_p11)
}
0x164e   :  { %1837 = dma.vmem_to_hbm [thread:$0]  %s1832_s10, 256, %s2840_s5, [#allocation16], %s2461_s13, %s2461_s13, %s2462_s14   ;;  %v1795_v55 = vpop.permute.xlu0 %1794  ;;  %v1685_v56 = vpop.permute.xlu1 %1684 }
0x164f   :  { %1797 = vst.msk [vmem:[#allocation3] sm:$0x3] %vm91_vm0, %v1795_v55  ;;  %1807 = vst.msk [vmem:[#allocation18] sm:$0x3] %vm91_vm0, %v1795_v55  ;;  %s2381_s26 = scalar_lea.vmem %s1816_s12, 256  ;;  %p2386_p13 = scmp.lt.s32.totalorder %s1816_s12, %s1816_s12 }
0x1650   :  { %1688 = vst.msk [vmem:[#allocation14 + $0xe] sm:$0x3] %vm91_vm0, %v1685_v56  ;;  %1792 = vst.msk [vmem:[#allocation2] sm:$0x3] %vm91_vm0, %v1685_v56  ;;  %p2382_p12 = scmp.ne.s32.totalorder %s1816_s12, %s2381_s26  ;;  %p2387_p0 = scmp.lt.s32.totalorder %s2381_s26, %s2381_s26 }
0x1651   :  { %1804 = vst.msk [vmem:[#allocation17] sm:$0x3] %vm91_vm0, %v1685_v56 }
0x1652   :  { %p2388_p1 = por %p2387_p0, %p2386_p13 }
0x1654   :  { %p2389_p2 = pnand %p2388_p1, %p2382_p12 }
0x1656   :  { %2392 = shalt.err (!%p2389_p2)
}
0x1657   :  { %s2393_s28 = scalar_lea.hbm %s2839_s4, 256 }
0x1658   :  { %p2394_p3 = scmp.ne.s32.totalorder %s2839_s4, %s2393_s28  ;;  %p2397_p4 = scmp.lt.u32.totalorder %s2393_s28, %s2839_s4 }
0x165a   :  { %p2399_p5 = pnand %p2397_p4, %p2394_p3 }
0x165c   :  { %2402 = shalt.err (!%p2399_p5)
}
0x165d   :  { %1821 = dma.vmem_to_hbm [thread:$0]  %s1816_s12, 256, %s2839_s4, [#allocation8], %s2461_s13, %s2461_s13, %s2462_s14  }
0x165e   :  { %s2403_s11 = scalar_lea.vmem %s2769_s0, 64  ;;  %p2408_p7 = scmp.lt.s32.totalorder %s2769_s0, %s2769_s0 }
0x165f   :  { %p2404_p6 = scmp.ne.s32.totalorder %s2769_s0, %s2403_s11  ;;  %p2409_p8 = scmp.lt.s32.totalorder %s2403_s11, %s2403_s11 }
0x1661   :  { %p2410_p9 = por %p2409_p8, %p2408_p7 }
0x1663   :  { %p2411_p10 = pnand %p2410_p9, %p2404_p6 }
0x1665   :  { %2414 = shalt.err (!%p2411_p10)
}
0x1666   :  { %s2415_s17 = scalar_lea.hbm %s2841_s6, 64 }
0x1667   :  { %p2416_p11 = scmp.ne.s32.totalorder %s2841_s6, %s2415_s17  ;;  %p2419_p12 = scmp.lt.u32.totalorder %s2415_s17, %s2841_s6 }
0x1669   :  { %p2421_p13 = pnand %p2419_p12, %p2416_p11 }
0x166b   :  { %2424 = shalt.err (!%p2421_p13)
}
0x166c   :  { %1849 = dma.vmem_to_hbm [thread:$0]  %s2769_s0, 64, %s2841_s6, [#allocation16], %s2461_s13, %s2461_s13, %s2462_s14   ;;  %v1801_v57 = vpop.permute.xlu1 %1800 }
0x166d   :  { %1803 = vst.msk [vmem:[#allocation5] sm:$0x3] %vm91_vm0, %v1801_v57  ;;  %1809 = vst.msk [vmem:[#allocation18 + $0x2] sm:$0x3] %vm91_vm0, %v1801_v57  ;;  %s2425_s22 = scalar_lea.vmem %s2776_s16, 64  ;;  %p2430_p1 = scmp.lt.s32.totalorder %s2776_s16, %s2776_s16 }
0x166e   :  { %p2426_p0 = scmp.ne.s32.totalorder %s2776_s16, %s2425_s22  ;;  %p2431_p2 = scmp.lt.s32.totalorder %s2425_s22, %s2425_s22 }
0x1670   :  { %p2432_p3 = por %p2431_p2, %p2430_p1 }
0x1672   :  { %p2433_p4 = pnand %p2432_p3, %p2426_p0 }
0x1674   :  { %2436 = shalt.err (!%p2433_p4)
}
0x1675   :  { %s2437_s1 = scalar_lea.hbm %s2842_s7, 64 }
0x1676   :  { %p2438_p5 = scmp.ne.s32.totalorder %s2842_s7, %s2437_s1  ;;  %p2441_p6 = scmp.lt.u32.totalorder %s2437_s1, %s2842_s7 }
0x1678   :  { %p2443_p7 = pnand %p2441_p6, %p2438_p5 }
0x167a   :  { %2446 = shalt.err (!%p2443_p7)
}
0x167b   :  { %1861 = dma.vmem_to_hbm [thread:$0]  %s2776_s16, 64, %s2842_s7, [#allocation19], %s2461_s13, %s2461_s13, %s2462_s14  }
0x167c   :  { %2453 = dma.done.wait [#allocation8], 256  }
0x167d   :  { %2454 = vsyncadd [#allocation8], 4294967040 }
0x167e   :  { %2455 = dma.done.wait [#allocation16], 320  }
0x167f   :  { %2456 = vsyncadd [#allocation16], 4294966976 }
0x1680   :  { %2457 = dma.done.wait [#allocation19], 64  }
0x1681   :  { %2458 = vsyncadd [#allocation19], 4294967232 }
0x1682   :  { %1874 = vsyncpa [#allocation7], 1 }
0x1683   :  { %1875 = vsyncpa [#allocation10], 1 }
0x1684   :  { %1876 = vsyncpa [#allocation13], 1 }
0x1685   :  { %1877 = vsyncpa [#allocation8], 1 }
0x1686   :  { %1878 = vsyncpa [#allocation16], 1 }
0x1687   :  { %1879 = vsyncpa [#allocation19], 1 }

</bundles_post_ra>
